<compile_context>
chip_gen: v7x
topology: tpu7x:2x2x1
jax: 0.10.0
libtpu: 0.0.40
codegen_flags: <defaults>
</compile_context>

<pallas_src>
import jax
import jax.numpy as jnp
from jax.experimental import pallas as pl
from jax.experimental.pallas import tpu as pltpu


# ----------------------------------------------------------------------------
# Weight preparation (runs ONCE, outside the jitted forward)
# ----------------------------------------------------------------------------
def _toeplitz_conv_weight_split(w_hwio, width):
    """(3,3,Cin,Cout) HWIO conv weight -> 3 blocks of (W*Cin, W*Cout).

    Block y (top/mid/bottom H-tap): row index = w_in*Cin + cin,
    column index = w_out*Cout + cout.  Encodes the 3-tap 'same' conv along W
    (zero padding folded in as missing taps).
    """
    kh, kw, cin, cout = w_hwio.shape
    # shift[dx, w_in, w_out] = 1  iff  w_in == w_out + dx - 1
    shift = jnp.stack([jnp.eye(width, k=1 - dx, dtype=w_hwio.dtype)
                       for dx in range(kw)])
    t = jnp.einsum("xiw,yxcq->yicwq", shift, w_hwio)      # (3, W, Cin, W, Cout)
    return [t[y].reshape(width * cin, width * cout) for y in range(kh)]


def _pool_matrix(width, channels, dtype=jnp.float32):
    """(W*C, (W//2)*C) matrix implementing avg_pool2d(kernel=(1,2)) as a matmul."""
    half = width // 2
    sel = (jnp.arange(width)[:, None] // 2 == jnp.arange(half)[None, :])
    sel = 0.5 * sel.astype(dtype)
    return jnp.kron(sel, jnp.eye(channels, dtype=dtype))


def prepare_kernel_params(params, config):
    """Fold BN into the conv weights, split H-taps, fold last pool, cast bf16."""
    width = config["input_size"]
    num_blocks = len(params["blocks"])
    layers = []
    last_pool = None
    for j, blk in enumerate(params["blocks"]):
        cout = blk["w1"].shape[-1]
        scale1 = jnp.tile(blk["scale1"], width)[None, :]            # (1, W*Cout)
        w1 = [(w * scale1).astype(jnp.bfloat16)
              for w in _toeplitz_conv_weight_split(blk["w1"], width)]
        sh1 = jnp.tile(blk["shift1"], width).reshape(1, width * cout)
        scale2 = jnp.tile(blk["scale2"], width)[None, :]
        w2 = [(w * scale2).astype(jnp.bfloat16)
              for w in _toeplitz_conv_weight_split(blk["w2"], width)]
        sh2 = jnp.tile(blk["shift2"], width).reshape(1, width * cout)
        layer = dict(w1=w1, sh1=sh1.astype(jnp.float32),
                     w2=w2, sh2=sh2.astype(jnp.float32))
        if j < num_blocks - 1:
            layer["pool"] = _pool_matrix(width, cout).astype(jnp.bfloat16)
        else:
            last_pool = _pool_matrix(width, cout)                   # keep f32
        layers.append(layer)
        width //= 2

    # Bottom Conv1d: torch weight (O, C*W_final) -> (W_final*C, O), rows w*C+c.
    w_t = params["w_bottom"]
    out_dim, k_in = w_t.shape
    c_last = params["blocks"][-1]["w2"].shape[-1]
    w_final = k_in // c_last
    wb = jnp.transpose(w_t.reshape(out_dim, c_last, w_final),
                       (2, 1, 0)).reshape(w_final * c_last, out_dim)
    # Fold the last avg-pool into the bottom weight: one fewer matmul in-kernel.
    wb_folded = (last_pool @ wb).astype(jnp.bfloat16)               # (W_pre*C, O)
    bb = params["b_bottom"].reshape(1, out_dim).astype(jnp.float32)
    return dict(layers=layers, wb=wb_folded, bb=bb)


# ----------------------------------------------------------------------------
# Fused forward pass: one pallas_call for the whole network
# ----------------------------------------------------------------------------
def transcriptor_forward(kparams, x_nchw, block_batch=None):
    B, c0, H, w0 = x_nchw.shape
    layers = kparams["layers"]
    out_dim = kparams["bb"].shape[-1]

    # Pick BT so each grid step's matmuls have M = BT*H ~ 128 rows.
    if block_batch is None:
        target = max(1, 128 // H)
        block_batch = 1
        for d in range(1, B + 1):
            if B % d == 0 and d <= target:
                block_batch = d
    BT = block_batch
    assert B % BT == 0
    M = BT * H
    assert M % 8 == 0 or M == B * H, "BT*H must be a multiple of 8"
    num_steps = B // BT

    # PyTorch NCHW -> dense (B*H, W*C) lane-packed activations (lane = w*C+c).
    x2d = jnp.transpose(x_nchw, (0, 2, 3, 1)).reshape(B * H, w0 * c0)

    # Flat list of resident weight operands (constant block index over grid).
    weight_ops, weight_specs = [], []

    def add_w(arr):
        weight_ops.append(arr)
        weight_specs.append(pl.BlockSpec(arr.shape, lambda i: (0, 0)))

    layer_slots = []
    for layer in layers:
        slot = {"w1": len(weight_ops)}
        for w in layer["w1"]:
            add_w(w)
        slot["sh1"] = len(weight_ops); add_w(layer["sh1"])
        slot["w2"] = len(weight_ops)
        for w in layer["w2"]:
            add_w(w)
        slot["sh2"] = len(weight_ops); add_w(layer["sh2"])
        if "pool" in layer:
            slot["pool"] = len(weight_ops); add_w(layer["pool"])
        else:
            slot["pool"] = None
        layer_slots.append(slot)
    wb_idx = len(weight_ops); add_w(kparams["wb"])
    bb_idx = len(weight_ops); add_w(kparams["bb"])
    n_weights = len(weight_ops)

    # One (M + 16, W*Cin) f32 scratch per conv layer; activation stored at
    # sublane offset 8 (tile-aligned), rows 7 / 8+M are never-written guards.
    GUARD = 8
    scratch_shapes = []
    for layer in layers:
        scratch_shapes.append(
            pltpu.VMEM((M + 2 * GUARD, layer["w1"][0].shape[0]), jnp.float32))
        scratch_shapes.append(
            pltpu.VMEM((M + 2 * GUARD, layer["w2"][0].shape[0]), jnp.float32))

    def kernel(*refs):
        x_ref = refs[0]
        wrefs = refs[1:1 + n_weights]
        o_ref = refs[1 + n_weights]
        scrs = refs[2 + n_weights:]

        # Per-row masks isolating samples stacked along the sublane axis.
        h_idx = jax.lax.broadcasted_iota(jnp.int32, (M, 1), 0) % H
        not_first = h_idx != 0          # row is not the first row of its sample
        not_last = h_idx != (H - 1)     # row is not the last row of its sample

        def conv_bn_relu(a, scr, wt, wm, wbt, sh):
            # One aligned store of the dense activation, then three row-shifted
            # window reads feeding three accumulated MXU matmuls (bf16 in,
            # f32 accumulate).  jnp.where (not multiply) keeps garbage in the
            # never-written guard rows from poisoning the matmul.
            scr[GUARD:GUARD + M, :] = a
            top = jnp.where(not_first, scr[GUARD - 1:GUARD - 1 + M, :], 0.0)
            bot = jnp.where(not_last, scr[GUARD + 1:GUARD + 1 + M, :], 0.0)
            y = jnp.dot(top.astype(jnp.bfloat16), wt[...],
                        preferred_element_type=jnp.float32)
            y += jnp.dot(a.astype(jnp.bfloat16), wm[...],
                         preferred_element_type=jnp.float32)
            y += jnp.dot(bot.astype(jnp.bfloat16), wbt[...],
                         preferred_element_type=jnp.float32)
            return jnp.maximum(y + sh[...], 0.0)

        a = x_ref[...]                                   # (M, W*C0) f32
        for j, slot in enumerate(layer_slots):
            i1 = slot["w1"]
            a = conv_bn_relu(a, scrs[2 * j], wrefs[i1], wrefs[i1 + 1],
                             wrefs[i1 + 2], wrefs[slot["sh1"]])
            i2 = slot["w2"]
            a = conv_bn_relu(a, scrs[2 * j + 1], wrefs[i2], wrefs[i2 + 1],
                             wrefs[i2 + 2], wrefs[slot["sh2"]])
            if slot["pool"] is not None:
                # avg_pool2d(kernel=(1,2)) as a lane-mixing matmul.
                a = jnp.dot(a.astype(jnp.bfloat16), wrefs[slot["pool"]][...],
                            preferred_element_type=jnp.float32)
        # Bottom 1x1 Conv1d (last pool folded into its weight) + bias.
        o_ref[...] = (jnp.dot(a.astype(jnp.bfloat16), wrefs[wb_idx][...],
                              preferred_element_type=jnp.float32)
                      + wrefs[bb_idx][...])

    out2d = pl.pallas_call(
        kernel,
        out_shape=jax.ShapeDtypeStruct((B * H, out_dim), jnp.float32),
        grid=(num_steps,),
        in_specs=[pl.BlockSpec((M, w0 * c0), lambda i: (i, 0))] + weight_specs,
        out_specs=pl.BlockSpec((M, out_dim), lambda i: (i, 0)),
        scratch_shapes=scratch_shapes,
        compiler_params=pltpu.CompilerParams(
            dimension_semantics=("parallel",)),   # batch steps across 2 TCs
    )(x2d, *weight_ops)

    # PyTorch Conv1d output layout (B, output_dim, H); tiny transpose in XLA.
    return jnp.swapaxes(out2d.reshape(B, H, out_dim), 1, 2)


# ----------------------------------------------------------------------------
# Parameter init (deterministic, synthetic) — raw params for the reference
# ----------------------------------------------------------------------------
def _make_bn(key, c, eps=1e-5):
    k1, k2, k3, k4 = jax.random.split(key, 4)
    gamma = 1.0 + 0.1 * jax.random.normal(k1, (c,), jnp.float32)
    beta = 0.1 * jax.random.normal(k2, (c,), jnp.float32)
    mean = 0.1 * jax.random.normal(k3, (c,), jnp.float32)
    var = 1.0 + 0.1 * jax.random.uniform(k4, (c,), jnp.float32)
    scale = gamma / jnp.sqrt(var + eps)           # eval-mode folded BN
    shift = beta - mean * scale
    return scale, shift


def init_transcriptor_params(config, key):
    num_blocks = config["num_blocks"]
    in_ch = config["in_channels"]
    out_ch = in_ch * 2
    size = config["input_size"]
    blocks = []
    for _ in range(num_blocks):
        key, kw1, kw2, kb1, kb2 = jax.random.split(key, 5)
        w1 = jax.random.normal(kw1, (3, 3, in_ch, out_ch), jnp.float32)
        w1 = w1 * (1.0 / jnp.sqrt(9.0 * in_ch))
        w2 = jax.random.normal(kw2, (3, 3, out_ch, out_ch), jnp.float32)
        w2 = w2 * (1.0 / jnp.sqrt(9.0 * out_ch))
        s1, sh1 = _make_bn(kb1, out_ch)
        s2, sh2 = _make_bn(kb2, out_ch)
        blocks.append(dict(w1=w1, scale1=s1, shift1=sh1,
                           w2=w2, scale2=s2, shift2=sh2))
        in_ch = out_ch
        out_ch *= 2
        size //= 2
    key, kwb, kbb = jax.random.split(key, 3)
    k_in = in_ch * size
    output_dim = config["output_dim"]
    w_bottom = jax.random.normal(kwb, (output_dim, k_in), jnp.float32)
    w_bottom = w_bottom * (1.0 / jnp.sqrt(float(k_in)))
    b_bottom = 0.1 * jax.random.normal(kbb, (output_dim,), jnp.float32)
    return dict(blocks=blocks, w_bottom=w_bottom, b_bottom=b_bottom)


# Pure-JAX reference (same eval-mode BN semantics) for validation.
def reference_forward(params, x_nchw):
    x = jnp.transpose(x_nchw, (0, 2, 3, 1))
    dn = ("NHWC", "HWIO", "NHWC")
    for blk in params["blocks"]:
        x = jax.lax.conv_general_dilated(x, blk["w1"], (1, 1),
                                         ((1, 1), (1, 1)),
                                         dimension_numbers=dn)
        x = jnp.maximum(x * blk["scale1"] + blk["shift1"], 0.0)
        x = jax.lax.conv_general_dilated(x, blk["w2"], (1, 1),
                                         ((1, 1), (1, 1)),
                                         dimension_numbers=dn)
        x = jnp.maximum(x * blk["scale2"] + blk["shift2"], 0.0)
        B, H, W, C = x.shape
        x = x.reshape(B, H, W // 2, 2, C).mean(axis=3)
    B, H, W, C = x.shape
    # flatten as PyTorch: index = c*W + w
    xcw = jnp.transpose(x, (0, 1, 3, 2)).reshape(B, H, C * W)
    out = jnp.einsum("bhk,ok->boh", xcw, params["w_bottom"])
    return out + params["b_bottom"].reshape(1, -1, 1)


if __name__ == "__main__":
    config = dict(num_blocks=2, output_dim=8, in_channels=4,
                  input_size=16, momentum=0.01)
    key = jax.random.PRNGKey(0)
    key, pkey, xkey = jax.random.split(key, 3)
    params = init_transcriptor_params(config, pkey)
    kparams = prepare_kernel_params(params, config)   # hoisted weight prep

    # input follows PyTorch NCHW: (batch, in_channels, H, W=input_size)
    B, H = 16, 16
    x = jax.random.normal(xkey, (B, config["in_channels"], H,
                                 config["input_size"]), jnp.float32)

    out = jax.jit(transcriptor_forward)(kparams, x)
    out = jax.block_until_ready(out)

    ref = reference_forward(params, x)
    assert out.shape == (B, config["output_dim"], H), out.shape
    max_err = float(jnp.max(jnp.abs(out - ref)))
    scale = float(jnp.max(jnp.abs(ref))) + 1e-6
    rel_err = max_err / scale
    assert rel_err < 5e-2, f"mismatch vs reference: abs={max_err}, rel={rel_err}"

    print("KERNEL_OK")
</pallas_src>

<mosaic_0001>
module attributes {stable_mosaic.version = 11 : i64} {
  func.func @kernel(%arg0: i32, %arg1: memref<128x64xf32, #tpu.memory_space<vmem>>, %arg2: memref<64x128xbf16, #tpu.memory_space<vmem>>, %arg3: memref<64x128xbf16, #tpu.memory_space<vmem>>, %arg4: memref<64x128xbf16, #tpu.memory_space<vmem>>, %arg5: memref<1x128xf32, #tpu.memory_space<vmem>>, %arg6: memref<128x128xbf16, #tpu.memory_space<vmem>>, %arg7: memref<128x128xbf16, #tpu.memory_space<vmem>>, %arg8: memref<128x128xbf16, #tpu.memory_space<vmem>>, %arg9: memref<1x128xf32, #tpu.memory_space<vmem>>, %arg10: memref<128x64xbf16, #tpu.memory_space<vmem>>, %arg11: memref<64x128xbf16, #tpu.memory_space<vmem>>, %arg12: memref<64x128xbf16, #tpu.memory_space<vmem>>, %arg13: memref<64x128xbf16, #tpu.memory_space<vmem>>, %arg14: memref<1x128xf32, #tpu.memory_space<vmem>>, %arg15: memref<128x128xbf16, #tpu.memory_space<vmem>>, %arg16: memref<128x128xbf16, #tpu.memory_space<vmem>>, %arg17: memref<128x128xbf16, #tpu.memory_space<vmem>>, %arg18: memref<1x128xf32, #tpu.memory_space<vmem>>, %arg19: memref<128x8xbf16, #tpu.memory_space<vmem>>, %arg20: memref<1x8xf32, #tpu.memory_space<vmem>>, %arg21: memref<128x8xf32, #tpu.memory_space<vmem>>, %arg22: memref<144x64xf32, #tpu.memory_space<vmem>>, %arg23: memref<144x128xf32, #tpu.memory_space<vmem>>, %arg24: memref<144x64xf32, #tpu.memory_space<vmem>>, %arg25: memref<144x128xf32, #tpu.memory_space<vmem>>) attributes {dimension_semantics = [#tpu.dimension_semantics<parallel>], iteration_bounds = array<i64: 2>, scalar_prefetch = 0 : i64, scratch_operands = 4 : i64, tpu.core_type = #tpu.core_type<tc>, window_params = [{transform_indices = @transform_0, window_bounds = array<i64: 128, 64>}, {pipeline_mode = #tpu.pipeline_mode<synchronous>, transform_indices = @transform_1, window_bounds = array<i64: 64, 128>}, {pipeline_mode = #tpu.pipeline_mode<synchronous>, transform_indices = @transform_2, window_bounds = array<i64: 64, 128>}, {pipeline_mode = #tpu.pipeline_mode<synchronous>, transform_indices = @transform_3, window_bounds = array<i64: 64, 128>}, {pipeline_mode = #tpu.pipeline_mode<synchronous>, transform_indices = @transform_4, window_bounds = array<i64: 1, 128>}, {pipeline_mode = #tpu.pipeline_mode<synchronous>, transform_indices = @transform_5, window_bounds = array<i64: 128, 128>}, {pipeline_mode = #tpu.pipeline_mode<synchronous>, transform_indices = @transform_6, window_bounds = array<i64: 128, 128>}, {pipeline_mode = #tpu.pipeline_mode<synchronous>, transform_indices = @transform_7, window_bounds = array<i64: 128, 128>}, {pipeline_mode = #tpu.pipeline_mode<synchronous>, transform_indices = @transform_8, window_bounds = array<i64: 1, 128>}, {pipeline_mode = #tpu.pipeline_mode<synchronous>, transform_indices = @transform_9, window_bounds = array<i64: 128, 64>}, {pipeline_mode = #tpu.pipeline_mode<synchronous>, transform_indices = @transform_10, window_bounds = array<i64: 64, 128>}, {pipeline_mode = #tpu.pipeline_mode<synchronous>, transform_indices = @transform_11, window_bounds = array<i64: 64, 128>}, {pipeline_mode = #tpu.pipeline_mode<synchronous>, transform_indices = @transform_12, window_bounds = array<i64: 64, 128>}, {pipeline_mode = #tpu.pipeline_mode<synchronous>, transform_indices = @transform_13, window_bounds = array<i64: 1, 128>}, {pipeline_mode = #tpu.pipeline_mode<synchronous>, transform_indices = @transform_14, window_bounds = array<i64: 128, 128>}, {pipeline_mode = #tpu.pipeline_mode<synchronous>, transform_indices = @transform_15, window_bounds = array<i64: 128, 128>}, {pipeline_mode = #tpu.pipeline_mode<synchronous>, transform_indices = @transform_16, window_bounds = array<i64: 128, 128>}, {pipeline_mode = #tpu.pipeline_mode<synchronous>, transform_indices = @transform_17, window_bounds = array<i64: 1, 128>}, {pipeline_mode = #tpu.pipeline_mode<synchronous>, transform_indices = @transform_18, window_bounds = array<i64: 128, 8>}, {pipeline_mode = #tpu.pipeline_mode<synchronous>, transform_indices = @transform_19, window_bounds = array<i64: 1, 8>}, {transform_indices = @transform_20, window_bounds = array<i64: 128, 8>}]} {
    %0 = tpu.iota {dimensions = array<i32: 0>} : vector<128x1xi32>
    %c16_i32 = arith.constant 16 : i32
    %c0_i32 = arith.constant 0 : i32
    %1 = arith.cmpi eq, %c16_i32, %c0_i32 : i32
    %c1_i32 = arith.constant 1 : i32
    %2 = arith.select %1, %c1_i32, %c16_i32 : i32
    %3 = vector.broadcast %2 : i32 to vector<128x1xi32>
    %4 = arith.remsi %0, %3 : vector<128x1xi32>
    %c0_i32_0 = arith.constant 0 : i32
    %5 = vector.broadcast %c0_i32_0 : i32 to vector<128x1xi32>
    %6 = arith.cmpi ne, %4, %5 : vector<128x1xi32>
    %c0_i32_1 = arith.constant 0 : i32
    %7 = vector.broadcast %c0_i32_1 : i32 to vector<128x1xi32>
    %8 = arith.cmpi slt, %4, %7 : vector<128x1xi32>
    %c0_i32_2 = arith.constant 0 : i32
    %9 = arith.cmpi slt, %2, %c0_i32_2 : i32
    %10 = vector.broadcast %9 : i1 to vector<128x1xi1>
    %11 = vector.broadcast %10 : vector<128x1xi1> to vector<128x1xi1>
    %12 = arith.xori %8, %11 : vector<128x1xi1>
    %13 = arith.andi %12, %6 : vector<128x1xi1>
    %14 = vector.broadcast %2 : i32 to vector<128x1xi32>
    %15 = arith.addi %4, %14 : vector<128x1xi32>
    %16 = arith.select %13, %15, %4 : vector<128x1xi1>, vector<128x1xi32>
    %c0_i32_3 = arith.constant 0 : i32
    %17 = vector.broadcast %c0_i32_3 : i32 to vector<128x1xi32>
    %18 = arith.cmpi ne, %16, %17 : vector<128x1xi32>
    %c15_i32 = arith.constant 15 : i32
    %19 = vector.broadcast %c15_i32 : i32 to vector<128x1xi32>
    %20 = arith.cmpi ne, %16, %19 : vector<128x1xi32>
    %c0 = arith.constant 0 : index
    %c0_4 = arith.constant 0 : index
    %21 = vector.load %arg1[%c0, %c0_4] : memref<128x64xf32, #tpu.memory_space<vmem>>, vector<128x64xf32>
    %c8 = arith.constant 8 : index
    %c0_5 = arith.constant 0 : index
    %22 = vector.load %arg22[%c8, %c0_5] : memref<144x64xf32, #tpu.memory_space<vmem>>, vector<128x64xf32>
    tpu.vector_store %arg22[%c8, %c0_5], %21 {strides = array<i32>} : memref<144x64xf32, #tpu.memory_space<vmem>>, vector<128x64xf32>,
    %c7 = arith.constant 7 : index
    %c0_6 = arith.constant 0 : index
    %23 = vector.load %arg22[%c7, %c0_6] : memref<144x64xf32, #tpu.memory_space<vmem>>, vector<128x64xf32>
    %cst = arith.constant 0.000000e+00 : f32
    %24 = vector.shape_cast %18 : vector<128x1xi1> to vector<128x1xi1>
    %25 = vector.broadcast %24 : vector<128x1xi1> to vector<128x64xi1>
    %26 = vector.broadcast %cst : f32 to vector<128x64xf32>
    %27 = arith.select %25, %23, %26 : vector<128x64xi1>, vector<128x64xf32>
    %c9 = arith.constant 9 : index
    %c0_7 = arith.constant 0 : index
    %28 = vector.load %arg22[%c9, %c0_7] : memref<144x64xf32, #tpu.memory_space<vmem>>, vector<128x64xf32>
    %cst_8 = arith.constant 0.000000e+00 : f32
    %29 = vector.shape_cast %20 : vector<128x1xi1> to vector<128x1xi1>
    %30 = vector.broadcast %29 : vector<128x1xi1> to vector<128x64xi1>
    %31 = vector.broadcast %cst_8 : f32 to vector<128x64xf32>
    %32 = arith.select %30, %28, %31 : vector<128x64xi1>, vector<128x64xf32>
    %33 = arith.truncf %27 : vector<128x64xf32> to vector<128x64xbf16>
    %c0_9 = arith.constant 0 : index
    %c0_10 = arith.constant 0 : index
    %34 = vector.load %arg2[%c0_9, %c0_10] : memref<64x128xbf16, #tpu.memory_space<vmem>>, vector<64x128xbf16>
    %cst_11 = arith.constant dense<0.000000e+00> : vector<128x128xf32>
    %35 = tpu.matmul %33, %34, %cst_11 {dimension_numbers = #tpu.dot_dimension_numbers<[1], [0], [0], [1], [0, 0, 1, 1], [], []>} : vector<128x64xbf16>, vector<64x128xbf16>, vector<128x128xf32> -> vector<128x128xf32>
    %36 = arith.truncf %21 : vector<128x64xf32> to vector<128x64xbf16>
    %c0_12 = arith.constant 0 : index
    %c0_13 = arith.constant 0 : index
    %37 = vector.load %arg3[%c0_12, %c0_13] : memref<64x128xbf16, #tpu.memory_space<vmem>>, vector<64x128xbf16>
    %cst_14 = arith.constant dense<0.000000e+00> : vector<128x128xf32>
    %38 = tpu.matmul %36, %37, %cst_14 {dimension_numbers = #tpu.dot_dimension_numbers<[1], [0], [0], [1], [0, 0, 1, 1], [], []>} : vector<128x64xbf16>, vector<64x128xbf16>, vector<128x128xf32> -> vector<128x128xf32>
    %39 = arith.addf %35, %38 : vector<128x128xf32>
    %40 = arith.truncf %32 : vector<128x64xf32> to vector<128x64xbf16>
    %c0_15 = arith.constant 0 : index
    %c0_16 = arith.constant 0 : index
    %41 = vector.load %arg4[%c0_15, %c0_16] : memref<64x128xbf16, #tpu.memory_space<vmem>>, vector<64x128xbf16>
    %cst_17 = arith.constant dense<0.000000e+00> : vector<128x128xf32>
    %42 = tpu.matmul %40, %41, %cst_17 {dimension_numbers = #tpu.dot_dimension_numbers<[1], [0], [0], [1], [0, 0, 1, 1], [], []>} : vector<128x64xbf16>, vector<64x128xbf16>, vector<128x128xf32> -> vector<128x128xf32>
    %43 = arith.addf %39, %42 : vector<128x128xf32>
    %c0_18 = arith.constant 0 : index
    %c0_19 = arith.constant 0 : index
    %44 = vector.load %arg5[%c0_18, %c0_19] : memref<1x128xf32, #tpu.memory_space<vmem>>, vector<1x128xf32>
    %45 = vector.broadcast %44 : vector<1x128xf32> to vector<128x128xf32>
    %46 = arith.addf %43, %45 : vector<128x128xf32>
    %cst_20 = arith.constant 0.000000e+00 : f32
    %47 = vector.broadcast %cst_20 : f32 to vector<128x128xf32>
    %48 = arith.maximumf %46, %47 : vector<128x128xf32>
    %c8_21 = arith.constant 8 : index
    %c0_22 = arith.constant 0 : index
    %49 = vector.load %arg23[%c8_21, %c0_22] : memref<144x128xf32, #tpu.memory_space<vmem>>, vector<128x128xf32>
    tpu.vector_store %arg23[%c8_21, %c0_22], %48 {strides = array<i32>} : memref<144x128xf32, #tpu.memory_space<vmem>>, vector<128x128xf32>,
    %c7_23 = arith.constant 7 : index
    %c0_24 = arith.constant 0 : index
    %50 = vector.load %arg23[%c7_23, %c0_24] : memref<144x128xf32, #tpu.memory_space<vmem>>, vector<128x128xf32>
    %cst_25 = arith.constant 0.000000e+00 : f32
    %51 = vector.shape_cast %18 : vector<128x1xi1> to vector<128x1xi1>
    %52 = vector.broadcast %51 : vector<128x1xi1> to vector<128x128xi1>
    %53 = vector.broadcast %cst_25 : f32 to vector<128x128xf32>
    %54 = arith.select %52, %50, %53 : vector<128x128xi1>, vector<128x128xf32>
    %c9_26 = arith.constant 9 : index
    %c0_27 = arith.constant 0 : index
    %55 = vector.load %arg23[%c9_26, %c0_27] : memref<144x128xf32, #tpu.memory_space<vmem>>, vector<128x128xf32>
    %cst_28 = arith.constant 0.000000e+00 : f32
    %56 = vector.shape_cast %20 : vector<128x1xi1> to vector<128x1xi1>
    %57 = vector.broadcast %56 : vector<128x1xi1> to vector<128x128xi1>
    %58 = vector.broadcast %cst_28 : f32 to vector<128x128xf32>
    %59 = arith.select %57, %55, %58 : vector<128x128xi1>, vector<128x128xf32>
    %60 = arith.truncf %54 : vector<128x128xf32> to vector<128x128xbf16>
    %c0_29 = arith.constant 0 : index
    %c0_30 = arith.constant 0 : index
    %61 = vector.load %arg6[%c0_29, %c0_30] : memref<128x128xbf16, #tpu.memory_space<vmem>>, vector<128x128xbf16>
    %cst_31 = arith.constant dense<0.000000e+00> : vector<128x128xf32>
    %62 = tpu.matmul %60, %61, %cst_31 {dimension_numbers = #tpu.dot_dimension_numbers<[1], [0], [0], [1], [0, 0, 1, 1], [], []>} : vector<128x128xbf16>, vector<128x128xbf16>, vector<128x128xf32> -> vector<128x128xf32>
    %63 = arith.truncf %48 : vector<128x128xf32> to vector<128x128xbf16>
    %c0_32 = arith.constant 0 : index
    %c0_33 = arith.constant 0 : index
    %64 = vector.load %arg7[%c0_32, %c0_33] : memref<128x128xbf16, #tpu.memory_space<vmem>>, vector<128x128xbf16>
    %cst_34 = arith.constant dense<0.000000e+00> : vector<128x128xf32>
    %65 = tpu.matmul %63, %64, %cst_34 {dimension_numbers = #tpu.dot_dimension_numbers<[1], [0], [0], [1], [0, 0, 1, 1], [], []>} : vector<128x128xbf16>, vector<128x128xbf16>, vector<128x128xf32> -> vector<128x128xf32>
    %66 = arith.addf %62, %65 : vector<128x128xf32>
    %67 = arith.truncf %59 : vector<128x128xf32> to vector<128x128xbf16>
    %c0_35 = arith.constant 0 : index
    %c0_36 = arith.constant 0 : index
    %68 = vector.load %arg8[%c0_35, %c0_36] : memref<128x128xbf16, #tpu.memory_space<vmem>>, vector<128x128xbf16>
    %cst_37 = arith.constant dense<0.000000e+00> : vector<128x128xf32>
    %69 = tpu.matmul %67, %68, %cst_37 {dimension_numbers = #tpu.dot_dimension_numbers<[1], [0], [0], [1], [0, 0, 1, 1], [], []>} : vector<128x128xbf16>, vector<128x128xbf16>, vector<128x128xf32> -> vector<128x128xf32>
    %70 = arith.addf %66, %69 : vector<128x128xf32>
    %c0_38 = arith.constant 0 : index
    %c0_39 = arith.constant 0 : index
    %71 = vector.load %arg9[%c0_38, %c0_39] : memref<1x128xf32, #tpu.memory_space<vmem>>, vector<1x128xf32>
    %72 = vector.broadcast %71 : vector<1x128xf32> to vector<128x128xf32>
    %73 = arith.addf %70, %72 : vector<128x128xf32>
    %cst_40 = arith.constant 0.000000e+00 : f32
    %74 = vector.broadcast %cst_40 : f32 to vector<128x128xf32>
    %75 = arith.maximumf %73, %74 : vector<128x128xf32>
    %76 = arith.truncf %75 : vector<128x128xf32> to vector<128x128xbf16>
    %c0_41 = arith.constant 0 : index
    %c0_42 = arith.constant 0 : index
    %77 = vector.load %arg10[%c0_41, %c0_42] : memref<128x64xbf16, #tpu.memory_space<vmem>>, vector<128x64xbf16>
    %cst_43 = arith.constant dense<0.000000e+00> : vector<128x64xf32>
    %78 = tpu.matmul %76, %77, %cst_43 {dimension_numbers = #tpu.dot_dimension_numbers<[1], [0], [0], [1], [0, 0, 1, 1], [], []>} : vector<128x128xbf16>, vector<128x64xbf16>, vector<128x64xf32> -> vector<128x64xf32>
    %c8_44 = arith.constant 8 : index
    %c0_45 = arith.constant 0 : index
    %79 = vector.load %arg24[%c8_44, %c0_45] : memref<144x64xf32, #tpu.memory_space<vmem>>, vector<128x64xf32>
    tpu.vector_store %arg24[%c8_44, %c0_45], %78 {strides = array<i32>} : memref<144x64xf32, #tpu.memory_space<vmem>>, vector<128x64xf32>,
    %c7_46 = arith.constant 7 : index
    %c0_47 = arith.constant 0 : index
    %80 = vector.load %arg24[%c7_46, %c0_47] : memref<144x64xf32, #tpu.memory_space<vmem>>, vector<128x64xf32>
    %cst_48 = arith.constant 0.000000e+00 : f32
    %81 = vector.shape_cast %18 : vector<128x1xi1> to vector<128x1xi1>
    %82 = vector.broadcast %81 : vector<128x1xi1> to vector<128x64xi1>
    %83 = vector.broadcast %cst_48 : f32 to vector<128x64xf32>
    %84 = arith.select %82, %80, %83 : vector<128x64xi1>, vector<128x64xf32>
    %c9_49 = arith.constant 9 : index
    %c0_50 = arith.constant 0 : index
    %85 = vector.load %arg24[%c9_49, %c0_50] : memref<144x64xf32, #tpu.memory_space<vmem>>, vector<128x64xf32>
    %cst_51 = arith.constant 0.000000e+00 : f32
    %86 = vector.shape_cast %20 : vector<128x1xi1> to vector<128x1xi1>
    %87 = vector.broadcast %86 : vector<128x1xi1> to vector<128x64xi1>
    %88 = vector.broadcast %cst_51 : f32 to vector<128x64xf32>
    %89 = arith.select %87, %85, %88 : vector<128x64xi1>, vector<128x64xf32>
    %90 = arith.truncf %84 : vector<128x64xf32> to vector<128x64xbf16>
    %c0_52 = arith.constant 0 : index
    %c0_53 = arith.constant 0 : index
    %91 = vector.load %arg11[%c0_52, %c0_53] : memref<64x128xbf16, #tpu.memory_space<vmem>>, vector<64x128xbf16>
    %cst_54 = arith.constant dense<0.000000e+00> : vector<128x128xf32>
    %92 = tpu.matmul %90, %91, %cst_54 {dimension_numbers = #tpu.dot_dimension_numbers<[1], [0], [0], [1], [0, 0, 1, 1], [], []>} : vector<128x64xbf16>, vector<64x128xbf16>, vector<128x128xf32> -> vector<128x128xf32>
    %93 = arith.truncf %78 : vector<128x64xf32> to vector<128x64xbf16>
    %c0_55 = arith.constant 0 : index
    %c0_56 = arith.constant 0 : index
    %94 = vector.load %arg12[%c0_55, %c0_56] : memref<64x128xbf16, #tpu.memory_space<vmem>>, vector<64x128xbf16>
    %cst_57 = arith.constant dense<0.000000e+00> : vector<128x128xf32>
    %95 = tpu.matmul %93, %94, %cst_57 {dimension_numbers = #tpu.dot_dimension_numbers<[1], [0], [0], [1], [0, 0, 1, 1], [], []>} : vector<128x64xbf16>, vector<64x128xbf16>, vector<128x128xf32> -> vector<128x128xf32>
    %96 = arith.addf %92, %95 : vector<128x128xf32>
    %97 = arith.truncf %89 : vector<128x64xf32> to vector<128x64xbf16>
    %c0_58 = arith.constant 0 : index
    %c0_59 = arith.constant 0 : index
    %98 = vector.load %arg13[%c0_58, %c0_59] : memref<64x128xbf16, #tpu.memory_space<vmem>>, vector<64x128xbf16>
    %cst_60 = arith.constant dense<0.000000e+00> : vector<128x128xf32>
    %99 = tpu.matmul %97, %98, %cst_60 {dimension_numbers = #tpu.dot_dimension_numbers<[1], [0], [0], [1], [0, 0, 1, 1], [], []>} : vector<128x64xbf16>, vector<64x128xbf16>, vector<128x128xf32> -> vector<128x128xf32>
    %100 = arith.addf %96, %99 : vector<128x128xf32>
    %c0_61 = arith.constant 0 : index
    %c0_62 = arith.constant 0 : index
    %101 = vector.load %arg14[%c0_61, %c0_62] : memref<1x128xf32, #tpu.memory_space<vmem>>, vector<1x128xf32>
    %102 = vector.broadcast %101 : vector<1x128xf32> to vector<128x128xf32>
    %103 = arith.addf %100, %102 : vector<128x128xf32>
    %cst_63 = arith.constant 0.000000e+00 : f32
    %104 = vector.broadcast %cst_63 : f32 to vector<128x128xf32>
    %105 = arith.maximumf %103, %104 : vector<128x128xf32>
    %c8_64 = arith.constant 8 : index
    %c0_65 = arith.constant 0 : index
    %106 = vector.load %arg25[%c8_64, %c0_65] : memref<144x128xf32, #tpu.memory_space<vmem>>, vector<128x128xf32>
    tpu.vector_store %arg25[%c8_64, %c0_65], %105 {strides = array<i32>} : memref<144x128xf32, #tpu.memory_space<vmem>>, vector<128x128xf32>,
    %c7_66 = arith.constant 7 : index
    %c0_67 = arith.constant 0 : index
    %107 = vector.load %arg25[%c7_66, %c0_67] : memref<144x128xf32, #tpu.memory_space<vmem>>, vector<128x128xf32>
    %cst_68 = arith.constant 0.000000e+00 : f32
    %108 = vector.shape_cast %18 : vector<128x1xi1> to vector<128x1xi1>
    %109 = vector.broadcast %108 : vector<128x1xi1> to vector<128x128xi1>
    %110 = vector.broadcast %cst_68 : f32 to vector<128x128xf32>
    %111 = arith.select %109, %107, %110 : vector<128x128xi1>, vector<128x128xf32>
    %c9_69 = arith.constant 9 : index
    %c0_70 = arith.constant 0 : index
    %112 = vector.load %arg25[%c9_69, %c0_70] : memref<144x128xf32, #tpu.memory_space<vmem>>, vector<128x128xf32>
    %cst_71 = arith.constant 0.000000e+00 : f32
    %113 = vector.shape_cast %20 : vector<128x1xi1> to vector<128x1xi1>
    %114 = vector.broadcast %113 : vector<128x1xi1> to vector<128x128xi1>
    %115 = vector.broadcast %cst_71 : f32 to vector<128x128xf32>
    %116 = arith.select %114, %112, %115 : vector<128x128xi1>, vector<128x128xf32>
    %117 = arith.truncf %111 : vector<128x128xf32> to vector<128x128xbf16>
    %c0_72 = arith.constant 0 : index
    %c0_73 = arith.constant 0 : index
    %118 = vector.load %arg15[%c0_72, %c0_73] : memref<128x128xbf16, #tpu.memory_space<vmem>>, vector<128x128xbf16>
    %cst_74 = arith.constant dense<0.000000e+00> : vector<128x128xf32>
    %119 = tpu.matmul %117, %118, %cst_74 {dimension_numbers = #tpu.dot_dimension_numbers<[1], [0], [0], [1], [0, 0, 1, 1], [], []>} : vector<128x128xbf16>, vector<128x128xbf16>, vector<128x128xf32> -> vector<128x128xf32>
    %120 = arith.truncf %105 : vector<128x128xf32> to vector<128x128xbf16>
    %c0_75 = arith.constant 0 : index
    %c0_76 = arith.constant 0 : index
    %121 = vector.load %arg16[%c0_75, %c0_76] : memref<128x128xbf16, #tpu.memory_space<vmem>>, vector<128x128xbf16>
    %cst_77 = arith.constant dense<0.000000e+00> : vector<128x128xf32>
    %122 = tpu.matmul %120, %121, %cst_77 {dimension_numbers = #tpu.dot_dimension_numbers<[1], [0], [0], [1], [0, 0, 1, 1], [], []>} : vector<128x128xbf16>, vector<128x128xbf16>, vector<128x128xf32> -> vector<128x128xf32>
    %123 = arith.addf %119, %122 : vector<128x128xf32>
    %124 = arith.truncf %116 : vector<128x128xf32> to vector<128x128xbf16>
    %c0_78 = arith.constant 0 : index
    %c0_79 = arith.constant 0 : index
    %125 = vector.load %arg17[%c0_78, %c0_79] : memref<128x128xbf16, #tpu.memory_space<vmem>>, vector<128x128xbf16>
    %cst_80 = arith.constant dense<0.000000e+00> : vector<128x128xf32>
    %126 = tpu.matmul %124, %125, %cst_80 {dimension_numbers = #tpu.dot_dimension_numbers<[1], [0], [0], [1], [0, 0, 1, 1], [], []>} : vector<128x128xbf16>, vector<128x128xbf16>, vector<128x128xf32> -> vector<128x128xf32>
    %127 = arith.addf %123, %126 : vector<128x128xf32>
    %c0_81 = arith.constant 0 : index
    %c0_82 = arith.constant 0 : index
    %128 = vector.load %arg18[%c0_81, %c0_82] : memref<1x128xf32, #tpu.memory_space<vmem>>, vector<1x128xf32>
    %129 = vector.broadcast %128 : vector<1x128xf32> to vector<128x128xf32>
    %130 = arith.addf %127, %129 : vector<128x128xf32>
    %cst_83 = arith.constant 0.000000e+00 : f32
    %131 = vector.broadcast %cst_83 : f32 to vector<128x128xf32>
    %132 = arith.maximumf %130, %131 : vector<128x128xf32>
    %133 = arith.truncf %132 : vector<128x128xf32> to vector<128x128xbf16>
    %c0_84 = arith.constant 0 : index
    %c0_85 = arith.constant 0 : index
    %134 = vector.load %arg19[%c0_84, %c0_85] : memref<128x8xbf16, #tpu.memory_space<vmem>>, vector<128x8xbf16>
    %cst_86 = arith.constant dense<0.000000e+00> : vector<128x8xf32>
    %135 = tpu.matmul %133, %134, %cst_86 {dimension_numbers = #tpu.dot_dimension_numbers<[1], [0], [0], [1], [0, 0, 1, 1], [], []>} : vector<128x128xbf16>, vector<128x8xbf16>, vector<128x8xf32> -> vector<128x8xf32>
    %c0_87 = arith.constant 0 : index
    %c0_88 = arith.constant 0 : index
    %136 = vector.load %arg20[%c0_87, %c0_88] : memref<1x8xf32, #tpu.memory_space<vmem>>, vector<1x8xf32>
    %137 = vector.broadcast %136 : vector<1x8xf32> to vector<128x8xf32>
    %138 = arith.addf %135, %137 : vector<128x8xf32>
    %c0_89 = arith.constant 0 : index
    %c0_90 = arith.constant 0 : index
    %139 = vector.load %arg21[%c0_89, %c0_90] : memref<128x8xf32, #tpu.memory_space<vmem>>, vector<128x8xf32>
    tpu.vector_store %arg21[%c0_89, %c0_90], %138 {strides = array<i32>} : memref<128x8xf32, #tpu.memory_space<vmem>>, vector<128x8xf32>,
    return
  }
  func.func @transform_0(%arg0: i32) -> (i32, i32) {
    %c0_i32 = arith.constant 0 : i32
    %c0_i32_0 = arith.constant 0 : i32
    return %arg0, %c0_i32 : i32, i32
  }
  func.func @transform_1(%arg0: i32) -> (i32, i32) {
    %c0_i32 = arith.constant 0 : i32
    %c0_i32_0 = arith.constant 0 : i32
    %c0_i32_1 = arith.constant 0 : i32
    return %c0_i32, %c0_i32_0 : i32, i32
  }
  func.func @transform_2(%arg0: i32) -> (i32, i32) {
    %c0_i32 = arith.constant 0 : i32
    %c0_i32_0 = arith.constant 0 : i32
    %c0_i32_1 = arith.constant 0 : i32
    return %c0_i32, %c0_i32_0 : i32, i32
  }
  func.func @transform_3(%arg0: i32) -> (i32, i32) {
    %c0_i32 = arith.constant 0 : i32
    %c0_i32_0 = arith.constant 0 : i32
    %c0_i32_1 = arith.constant 0 : i32
    return %c0_i32, %c0_i32_0 : i32, i32
  }
  func.func @transform_4(%arg0: i32) -> (i32, i32) {
    %c0_i32 = arith.constant 0 : i32
    %c0_i32_0 = arith.constant 0 : i32
    %c0_i32_1 = arith.constant 0 : i32
    return %c0_i32, %c0_i32_0 : i32, i32
  }
  func.func @transform_5(%arg0: i32) -> (i32, i32) {
    %c0_i32 = arith.constant 0 : i32
    %c0_i32_0 = arith.constant 0 : i32
    %c0_i32_1 = arith.constant 0 : i32
    return %c0_i32, %c0_i32_0 : i32, i32
  }
  func.func @transform_6(%arg0: i32) -> (i32, i32) {
    %c0_i32 = arith.constant 0 : i32
    %c0_i32_0 = arith.constant 0 : i32
    %c0_i32_1 = arith.constant 0 : i32
    return %c0_i32, %c0_i32_0 : i32, i32
  }
  func.func @transform_7(%arg0: i32) -> (i32, i32) {
    %c0_i32 = arith.constant 0 : i32
    %c0_i32_0 = arith.constant 0 : i32
    %c0_i32_1 = arith.constant 0 : i32
    return %c0_i32, %c0_i32_0 : i32, i32
  }
  func.func @transform_8(%arg0: i32) -> (i32, i32) {
    %c0_i32 = arith.constant 0 : i32
    %c0_i32_0 = arith.constant 0 : i32
    %c0_i32_1 = arith.constant 0 : i32
    return %c0_i32, %c0_i32_0 : i32, i32
  }
  func.func @transform_9(%arg0: i32) -> (i32, i32) {
    %c0_i32 = arith.constant 0 : i32
    %c0_i32_0 = arith.constant 0 : i32
    %c0_i32_1 = arith.constant 0 : i32
    return %c0_i32, %c0_i32_0 : i32, i32
  }
  func.func @transform_10(%arg0: i32) -> (i32, i32) {
    %c0_i32 = arith.constant 0 : i32
    %c0_i32_0 = arith.constant 0 : i32
    %c0_i32_1 = arith.constant 0 : i32
    return %c0_i32, %c0_i32_0 : i32, i32
  }
  func.func @transform_11(%arg0: i32) -> (i32, i32) {
    %c0_i32 = arith.constant 0 : i32
    %c0_i32_0 = arith.constant 0 : i32
    %c0_i32_1 = arith.constant 0 : i32
    return %c0_i32, %c0_i32_0 : i32, i32
  }
  func.func @transform_12(%arg0: i32) -> (i32, i32) {
    %c0_i32 = arith.constant 0 : i32
    %c0_i32_0 = arith.constant 0 : i32
    %c0_i32_1 = arith.constant 0 : i32
    return %c0_i32, %c0_i32_0 : i32, i32
  }
  func.func @transform_13(%arg0: i32) -> (i32, i32) {
    %c0_i32 = arith.constant 0 : i32
    %c0_i32_0 = arith.constant 0 : i32
    %c0_i32_1 = arith.constant 0 : i32
    return %c0_i32, %c0_i32_0 : i32, i32
  }
  func.func @transform_14(%arg0: i32) -> (i32, i32) {
    %c0_i32 = arith.constant 0 : i32
    %c0_i32_0 = arith.constant 0 : i32
    %c0_i32_1 = arith.constant 0 : i32
    return %c0_i32, %c0_i32_0 : i32, i32
  }
  func.func @transform_15(%arg0: i32) -> (i32, i32) {
    %c0_i32 = arith.constant 0 : i32
    %c0_i32_0 = arith.constant 0 : i32
    %c0_i32_1 = arith.constant 0 : i32
    return %c0_i32, %c0_i32_0 : i32, i32
  }
  func.func @transform_16(%arg0: i32) -> (i32, i32) {
    %c0_i32 = arith.constant 0 : i32
    %c0_i32_0 = arith.constant 0 : i32
    %c0_i32_1 = arith.constant 0 : i32
    return %c0_i32, %c0_i32_0 : i32, i32
  }
  func.func @transform_17(%arg0: i32) -> (i32, i32) {
    %c0_i32 = arith.constant 0 : i32
    %c0_i32_0 = arith.constant 0 : i32
    %c0_i32_1 = arith.constant 0 : i32
    return %c0_i32, %c0_i32_0 : i32, i32
  }
  func.func @transform_18(%arg0: i32) -> (i32, i32) {
    %c0_i32 = arith.constant 0 : i32
    %c0_i32_0 = arith.constant 0 : i32
    %c0_i32_1 = arith.constant 0 : i32
    return %c0_i32, %c0_i32_0 : i32, i32
  }
  func.func @transform_19(%arg0: i32) -> (i32, i32) {
    %c0_i32 = arith.constant 0 : i32
    %c0_i32_0 = arith.constant 0 : i32
    %c0_i32_1 = arith.constant 0 : i32
    return %c0_i32, %c0_i32_0 : i32, i32
  }
  func.func @transform_20(%arg0: i32) -> (i32, i32) {
    %c0_i32 = arith.constant 0 : i32
    %c0_i32_0 = arith.constant 0 : i32
    return %arg0, %c0_i32 : i32, i32
  }
}

</mosaic_0001>

<bundles_post_ra>
// kernel: transcriptor_forward.1
= control target key start
LH: loop header
LB: loop body
LE: loop exit
PB: predicated region body
PF: predicated region fallthrough
CT: control target
= control target key end

     0   :  { %s6043_s0 = inlined_call_operand.vmem [shape: f32[256,64], index: 0, kind: input, shape index: {}]   ;;  %s6044_s1 = inlined_call_operand.vmem [shape: bf16[64,128], index: 1, kind: input, shape index: {}]   ;;  %s6045_s2 = inlined_call_operand.vmem [shape: bf16[64,128], index: 2, kind: input, shape index: {}]   ;;  %s6046_s3 = inlined_call_operand.vmem [shape: bf16[64,128], index: 3, kind: input, shape index: {}]   ;;  %s6047_s4 = inlined_call_operand.vmem [shape: f32[1,128], index: 4, kind: input, shape index: {}]   ;;  %s6048_s5 = inlined_call_operand.vmem [shape: bf16[128,128], index: 5, kind: input, shape index: {}]   ;;  %s6049_s6 = inlined_call_operand.vmem [shape: bf16[128,128], index: 6, kind: input, shape index: {}]   ;;  %s6050_s7 = inlined_call_operand.vmem [shape: bf16[128,128], index: 7, kind: input, shape index: {}]   ;;  %s6051_s8 = inlined_call_operand.vmem [shape: f32[1,128], index: 8, kind: input, shape index: {}]   ;;  %s6052_s9 = inlined_call_operand.vmem [shape: bf16[128,64], index: 9, kind: input, shape index: {}]   ;;  %s6053_s10 = inlined_call_operand.vmem [shape: bf16[64,128], index: 10, kind: input, shape index: {}]   ;;  %s6054_s11 = inlined_call_operand.vmem [shape: bf16[64,128], index: 11, kind: input, shape index: {}]   ;;  %s6055_s12 = inlined_call_operand.vmem [shape: bf16[64,128], index: 12, kind: input, shape index: {}]   ;;  %s6056_s13 = inlined_call_operand.vmem [shape: f32[1,128], index: 13, kind: input, shape index: {}]   ;;  %s6057_s14 = inlined_call_operand.vmem [shape: bf16[128,128], index: 14, kind: input, shape index: {}]   ;;  %s6058_s15 = inlined_call_operand.vmem [shape: bf16[128,128], index: 15, kind: input, shape index: {}]   ;;  %s6059_s16 = inlined_call_operand.vmem [shape: bf16[128,128], index: 16, kind: input, shape index: {}]   ;;  %s6060_s17 = inlined_call_operand.vmem [shape: f32[1,128], index: 17, kind: input, shape index: {}]   ;;  %s6061_s18 = inlined_call_operand.vmem [shape: bf16[128,8], index: 18, kind: input, shape index: {}]   ;;  %s6062_s19 = inlined_call_operand.vmem [shape: f32[1,8], index: 19, kind: input, shape index: {}]   ;;  %s6063_s20 = inlined_call_operand.vmem [shape: f32[256,8], index: 20, kind: output, shape index: {}]  }
   0x1   :  { %6094 = sst [smem:[#allocation6_spill]] %s6043_s0 }
   0x2   :  { %6095 = sst [smem:[#allocation7_spill]] %s6044_s1  ;;  %s5097_s1 = smov 0  }
   0x3   :  { %6096 = sst [smem:[#allocation8_spill]] %s6045_s2 }
   0x4   :  { %6097 = sst [smem:[#allocation9_spill]] %s6046_s3 }
   0x5   :  { %6098 = sst [smem:[#allocation10_spill]] %s6047_s4 }
   0x6 LB: > { %s3894_s22 = sadd.s32 4294967295, %s4989_s1   ;;  %p3898_p0 = scmp.ge.s32.totalorder %s4989_s1, 1  ;;  %s4989_s1 = sphi %s5097_s1, %s30_s1  }
   0x7   : > { %p563_p1 = scmp.lt.s32.totalorder %s4989_s1, 3 }
   0x9   : > { %p564_p2 = pnand %p3898_p0, %p563_p1 }
   0xa   : > { %s6099_s2 = sld [smem:[#allocation8_spill]] (!%p564_p2)  ;;  %s3899_s25 = sshll.u32 (!%p564_p2), %s3894_s22, 4  ;;  %v634_v4 = vlaneseq (!%p564_p2)  ;;  %vm6069_vm0 = vcmask (!%p564_p2), 523264   ;;  %v6102_v45 = vmov (!%p564_p2), 0  ;;  %v6106_v48 = vmov (!%p564_p2), 0  ;;  %v4949_v47 = vld [vmem:[%s6055_s12 + $0x10] sm:$0xff] (!%p564_p2)  }
   0xb   : > { %567 = sbr.rel (%p564_p2) target bundleno = 1637 (0x665), region = 100  ;;  %p622_p3 = scmp.lt.s32.totalorder (!%p564_p2), %s3899_s25, 31 }
   0xc   : > { %s6100_s22 = sld [smem:[#allocation6_spill]] (!%p564_p2)  ;;  %s6101_s26 = sld [smem:[#allocation7_spill]] (!%p564_p2)  ;;  %v5167_v19 = vshrl.u32 (!%p564_p2), %v634_v4, 7 }
   0xd   : > { %s6116_s24 = sld [smem:[#allocation9_spill]] (!%p564_p2)  ;;  %s6135_s28 = sld [smem:[#allocation10_spill]] (!%p564_p2) }
   0xe   : > { %v637_v25 = vadd.s32 (!%p564_p2), 16, %v5167_v19  ;;  %v639_v26 = vadd.s32 (!%p564_p2), 32, %v5167_v19  ;;  %v641_v28 = vadd.s32 (!%p564_p2), 48, %v5167_v19  ;;  %v643_v30 = vadd.s32 (!%p564_p2), 64, %v5167_v19 }
   0xf   : > { %v645_v31 = vadd.s32 (!%p564_p2), 80, %v5167_v19  ;;  %v647_v32 = vadd.s32 (!%p564_p2), 96, %v5167_v19  ;;  %v655_v33 = vand.u32 (!%p564_p2), 15, %v5167_v19  ;;  %v649_v37 = vadd.s32 (!%p564_p2), 112, %v5167_v19 }
  0x10   : > { %v4895_v0 = vld [vmem:[%s6099_s2] sm:$0xff] (!%p564_p2)   ;;  %v4896_v1 = vld [vmem:[%s6099_s2 + $0x8] sm:$0xff] (!%p564_p2)   ;;  %v4897_v2 = vld [vmem:[%s6099_s2 + $0x10] sm:$0xff] (!%p564_p2)   ;;  %v669_v34 = vand.u32 (!%p564_p2), 15, %v637_v25  ;;  %v683_v35 = vand.u32 (!%p564_p2), 15, %v639_v26  ;;  %v697_v36 = vand.u32 (!%p564_p2), 15, %v641_v28 }
  0x11   : > { %4342 = vmatprep.subr.bf16.mxu0 (!%p564_p2), %v4895_v0  ;;  %v4898_v3 = vld [vmem:[%s6099_s2 + $0x18] sm:$0xff] (!%p564_p2)   ;;  %v636_v38 = vadd.s32 (!%p564_p2), 8, %v5167_v19  ;;  %v711_v40 = vand.u32 (!%p564_p2), 15, %v643_v30  ;;  %v725_v41 = vand.u32 (!%p564_p2), 15, %v645_v31  ;;  %v739_v42 = vand.u32 (!%p564_p2), 15, %v647_v32  ;;  %v4907_v25 = vld [vmem:[%s6049_s6] sm:$0xff] (!%p564_p2)  }
  0x12   : > { %4343 = vmatpush3.bf16.msra.mxu0 %v4895_v0  ;;  %s6229_s25 = smov (!%p622_p3, %s3899_s25), 31  ;;  %v4899_v15 = vld [vmem:[%s6101_s26] sm:$0xff]   ;;  %v4900_v29 = vld [vmem:[%s6101_s26 + $0x8] sm:$0xff]   ;;  %v4901_v39 = vld [vmem:[%s6101_s26 + $0x10] sm:$0xff]   ;;  %v638_v43 = vadd.s32 24, %v5167_v19  ;;  %vm5215_vm1 = vcmp.ne.s32.totalorder %v655_v33, 0  ;;  %4414 = vmatprep.subr.bf16.mxu1 %v4907_v25 }
  0x13   : > { %4344 = vmatprep.subr.bf16.mxu0 %v4896_v1  ;;  %s3900_s4 = sshll.u32 %s6229_s25, 3  ;;  %v6103_v45 = vsel %vm5215_vm1, 4294967295, %v6102_v45  ;;  %vm5221_vm2 = vcmp.ne.s32.totalorder %v669_v34, 0  ;;  %vm5225_vm3 = vcmp.ne.s32.totalorder %v683_v35, 0  ;;  %vm5235_vm4 = vcmp.ne.s32.totalorder %v697_v36, 0  ;;  %v4902_v56 = vld [vmem:[%s6101_s26 + $0x18] sm:$0xff]   ;;  %4415 = vmatpush3.bf16.msra.mxu1 %v4907_v25 }
  0x14   : > { %s5125_s23 = scalar_lea.vmem %s6100_s22, %s3900_s4  ;;  %v6107_v48 = vsel %vm5225_vm3, 4294967295, %v6106_v48  ;;  %v753_v54 = vand.u32 15, %v649_v37  ;;  %v662_v55 = vand.u32 15, %v636_v38  ;;  %vm5244_vm5 = vcmp.ne.s32.totalorder %v711_v40, 0  ;;  %v4908_v26 = vld [vmem:[%s6049_s6 + $0x8] sm:$0xff]   ;;  %v4909_v34 = vld [vmem:[%s6049_s6 + $0x10] sm:$0xff]   ;;  %s6006_s3 = scalar_lea.vmem %s6063_s20, %s3900_s4 }
  0x15   : > { %v875_v5 = vld [vmem:[%s5125_s23] sm:$0xff]  ;;  %v876_v6 = vld [vmem:[%s5125_s23 + $0x8] sm:$0xff]  ;;  %v877_v7 = vld [vmem:[%s5125_s23 + $0x10] sm:$0xff]  ;;  %vm5250_vm6 = vcmp.ne.s32.totalorder %v725_v41, 0  ;;  %v640_v61 = vadd.s32 40, %v5167_v19  ;;  %vm5257_vm7 = vcmp.ne.s32.totalorder %v739_v42, 0  ;;  %4416 = vmatprep.subr.bf16.mxu1 %v4908_v26 }
  0x16   : > { %4345 = vmatpush3.bf16.msra.mxu0 %v4896_v1  ;;  %892 = vst.msk [vmem:[#allocation2 + $0x8] sm:$0xff] %vm6069_vm0, %v875_v5  ;;  %893 = vst.msk [vmem:[#allocation2 + $0x10] sm:$0xff] %vm6069_vm0, %v876_v6  ;;  %v1052_v8 = vpack.c.bf16 %v876_v6, %v875_v5  ;;  %v878_v9 = vld [vmem:[%s5125_s23 + $0x18] sm:$0xff]  ;;  %v879_v10 = vld [vmem:[%s5125_s23 + $0x20] sm:$0xff]  ;;  %v676_v0 = vand.u32 15, %v638_v43  ;;  %vm5288_vm8 = vcmp.ne.s32.totalorder %v753_v54, 0 }
  0x17   : > { %4346 = vmatprep.subr.bf16.mxu0 %v4897_v2  ;;  %894 = vst.msk [vmem:[#allocation2 + $0x18] sm:$0xff] %vm6069_vm0, %v877_v7  ;;  %v880_v11 = vld [vmem:[%s5125_s23 + $0x28] sm:$0xff]  ;;  %895 = vst.msk [vmem:[#allocation2 + $0x20] sm:$0xff] %vm6069_vm0, %v878_v9  ;;  %v5140_v12 = vld [vmem:[%s5125_s23 + $0x30] sm:$0xff]  ;;  %v1053_v24 = vpack.c.bf16 %v878_v9, %v877_v7  ;;  %vm5294_vm9 = vcmp.ne.s32.totalorder %v662_v55, 15  ;;  %v5334_v32 = vadd.s32 88, %v5167_v19  ;;  %4417 = vmatpush3.bf16.msra.mxu1 %v4908_v26 }
  0x18   : > { %896 = vst.msk [vmem:[#allocation2 + $0x28] sm:$0xff] %vm6069_vm0, %v879_v10  ;;  %897 = vst.msk [vmem:[#allocation2 + $0x30] sm:$0xff] %vm6069_vm0, %v880_v11  ;;  %v5143_v13 = vld [vmem:[%s5125_s23 + $0x38] sm:$0xff]  ;;  %v5146_v14 = vld [vmem:[%s5125_s23 + $0x40] sm:$0xff]  ;;  %4350 = vmatprep.mubr.msk.bf16.mxu0 %vm6069_vm0, %v1052_v8  ;;  %v1054_v27 = vpack.c.bf16 %v880_v11, %v879_v10  ;;  %vm5308_vm10 = vcmp.ne.s32.totalorder %v676_v0, 15  ;;  %v5347_v33 = vadd.s32 104, %v5167_v19  ;;  %4418 = vmatprep.subr.bf16.mxu1 %v4909_v34 }
  0x19   : > { %898 = vst.msk [vmem:[#allocation2 + $0x38] sm:$0xff] %vm6069_vm0, %v5140_v12  ;;  %899 = vst.msk [vmem:[#allocation2 + $0x40] sm:$0xff] %vm6069_vm0, %v5143_v13  ;;  %v5157_v16 = vld [vmem:[%s5125_s23 + $0x48] sm:$0xff]  ;;  %v5162_v17 = vld [vmem:[%s5125_s23 + $0x50] sm:$0xff]  ;;  %v1055_v44 = vpack.c.bf16 %v5143_v13, %v5140_v12  ;;  %v732_v25 = vand.u32 15, %v5334_v32 }
  0x1a   : > { %900 = vst.msk [vmem:[#allocation2 + $0x48] sm:$0xff] %vm6069_vm0, %v5146_v14  ;;  %v5165_v18 = vld [vmem:[%s5125_s23 + $0x58] sm:$0xff]  ;;  %4347 = vmatpush3.bf16.msra.mxu0 %v4897_v2  ;;  %901 = vst.msk [vmem:[#allocation2 + $0x50] sm:$0xff] %vm6069_vm0, %v5157_v16  ;;  %v5176_v20 = vld [vmem:[%s5125_s23 + $0x60] sm:$0xff]  ;;  %v1056_v49 = vpack.c.bf16 %v5157_v16, %v5146_v14  ;;  %v690_v14 = vand.u32 15, %v640_v61  ;;  %v6121_v16 = vmov 0 }
  0x1b   : > { %902 = vst.msk [vmem:[#allocation2 + $0x58] sm:$0xff] %vm6069_vm0, %v5162_v17  ;;  %903 = vst.msk [vmem:[#allocation2 + $0x60] sm:$0xff] %vm6069_vm0, %v5165_v18  ;;  %v5179_v21 = vld [vmem:[%s5125_s23 + $0x68] sm:$0xff]  ;;  %v5182_v22 = vld [vmem:[%s5125_s23 + $0x70] sm:$0xff]  ;;  %4348 = vmatprep.subr.bf16.mxu0 %v4898_v3  ;;  %v6122_v16 = vsel %vm5308_vm10, 4294967295, %v6121_v16  ;;  %4419 = vmatpush3.bf16.msra.mxu1 %v4909_v34  ;;  %vm5432_vm14 = vcmp.ne.s32.totalorder %v732_v25, 15 }
  0x1c   : > { %904 = vst.msk [vmem:[#allocation2 + $0x68] sm:$0xff] %vm6069_vm0, %v5176_v20  ;;  %905 = vst.msk [vmem:[#allocation2 + $0x70] sm:$0xff] %vm6069_vm0, %v5179_v21  ;;  %v5189_v23 = vld [vmem:[%s5125_s23 + $0x78] sm:$0xff]  ;;  %v1058_v30 = vpack.c.bf16 %v5179_v21, %v5176_v20  ;;  %vm5340_vm11 = vcmp.ne.s32.totalorder %v690_v14, 15  ;;  %v4911_v40 = vld [vmem:[%s6049_s6 + $0x20] sm:$0xff]  }
  0x1d   : > { %906 = vst.msk [vmem:[#allocation2 + $0x78] sm:$0xff] %vm6069_vm0, %v5182_v22  ;;  %907 = vst.msk [vmem:[#allocation2 + $0x80] sm:$0xff] %vm6069_vm0, %v5189_v23  ;;  %v5219_v46 = vld [vmem:[#allocation2 + $0x7] sm:$0xff]  ;;  %v909_v35 = vld [vmem:[#allocation2 + $0xf] sm:$0xff]  ;;  %v1059_v38 = vpack.c.bf16 %v5189_v23, %v5182_v22 }
  0x1e   : > { %4349 = vmatpush3.bf16.msra.mxu0 %v4898_v3  ;;  %v5231_v50 = vld [vmem:[#allocation2 + $0x17] sm:$0xff]  ;;  %v956_v1 = vsel %vm5215_vm1, %v5219_v46, 0.0  ;;  %v5273_v3 = vld [vmem:[%s6116_s24] sm:$0xff]   ;;  %v4912_v43 = vld [vmem:[%s6049_s6 + $0x28] sm:$0xff]  }
  0x1f   : > { %4366 = vmatprep.subr.bf16.mxu0 %v4899_v15  ;;  %v5233_v51 = vld [vmem:[#allocation2 + $0x27] sm:$0xff]  ;;  %v958_v2 = vsel %vm5221_vm2, %v5231_v50, 0.0  ;;  %v5298_v11 = vld [vmem:[#allocation2 + $0x11] sm:$0xff]  ;;  %v911_v41 = vld [vmem:[#allocation2 + $0x1f] sm:$0xff] }
  0x20   : > { %v5239_v53 = vld [vmem:[#allocation2 + $0x37] sm:$0xff]  ;;  %v960_v4 = vsel %vm5225_vm3, %v5233_v51, 0.0  ;;  %v5303_v13 = vld [vmem:[#allocation2 + $0x21] sm:$0xff]  ;;  %v913_v42 = vld [vmem:[#allocation2 + $0x2f] sm:$0xff]  ;;  %v1037_v22 = vpack.c.bf16 %v911_v41, %v958_v2 }
  0x21   : > { %4351 = vmatmul.mubr.msk.bf16.vlgmr.msra.gmra.mrb[0].mxu0 %vm6069_vm0, %v1053_v24  ;;  %v5248_v58 = vld [vmem:[#allocation2 + $0x47] sm:$0xff]  ;;  %v962_v5 = vsel %vm5235_vm4, %v5239_v53, 0.0  ;;  %v5313_v24 = vadd.s32 72, %v5167_v19  ;;  %v5331_v31 = vld [vmem:[#allocation2 + $0x31] sm:$0xff]  ;;  %v915_v46 = vld [vmem:[#allocation2 + $0x3f] sm:$0xff] }
  0x22   : > { %4367 = vmatpush3.bf16.msra.mxu0 %v4899_v15  ;;  %4354 = vmatprep.mubr.msk.bf16.mxu0 %vm6069_vm0, %v1054_v27  ;;  %v5254_v60 = vld [vmem:[#allocation2 + $0x57] sm:$0xff]  ;;  %v964_v6 = vsel %vm5244_vm5, %v5248_v58, 0.0  ;;  %v5306_v15 = vadd.s32 56, %v5167_v19  ;;  %v1057_v27 = vpack.c.bf16 %v5165_v18, %v5162_v17  ;;  %v1023_v17 = vsel %vm5308_vm10, %v5303_v13, 0.0  ;;  %v4904_v23 = vld [vmem:[%s6116_s24 + $0x8] sm:$0xff]  }
  0x23   : > { %4368 = vmatprep.subr.bf16.mxu0 %v4900_v29  ;;  %v5261_v63 = vld [vmem:[#allocation2 + $0x67] sm:$0xff]  ;;  %v966_v7 = vsel %vm5250_vm6, %v5254_v60, 0.0  ;;  %v6123_v18 = vmov 0  ;;  %v718_v21 = vand.u32 15, %v5313_v24  ;;  %v1025_v36 = vsel %vm5340_vm11, %v5331_v31, 0.0  ;;  %v4910_v37 = vld [vmem:[%s6049_s6 + $0x18] sm:$0xff]  }
  0x24   : > { %v5292_v9 = vld [vmem:[#allocation2 + $0x77] sm:$0xff]  ;;  %v968_v12 = vsel %vm5257_vm7, %v5261_v63, 0.0  ;;  %v6124_v18 = vsel %vm5340_vm11, 4294967295, %v6123_v18  ;;  %v704_v20 = vand.u32 15, %v5306_v15  ;;  %4420 = vmatprep.subr.bf16.mxu1 %v4910_v37  ;;  %v1039_v51 = vpack.c.bf16 %v915_v46, %v962_v5  ;;  %v921_v61 = vld [vmem:[#allocation2 + $0x6f] sm:$0xff]  ;;  %v923_v0 = vld [vmem:[#allocation2 + $0x7f] sm:$0xff] }
  0x25   : > { %v970_v28 = vsel %vm5288_vm8, %v5292_v9, 0.0  ;;  %4421 = vmatpush3.bf16.msra.mxu1 %v4910_v37  ;;  %v4905_v50 = vld [vmem:[%s6116_s24 + $0x10] sm:$0xff]   ;;  %v4906_v54 = vld [vmem:[%s6116_s24 + $0x18] sm:$0xff]   ;;  %v1042_v58 = vpack.c.bf16 %v921_v61, %v968_v12  ;;  %vm5414_vm13 = vcmp.ne.s32.totalorder %v718_v21, 15  ;;  %v746_v13 = vand.u32 15, %v5347_v33  ;;  %v987_v37 = vld [vmem:[#allocation2 + $0x81] sm:$0xff] }
  0x26   : > { %4369 = vmatpush3.bf16.msra.mxu0 %v4900_v29  ;;  %v1021_v29 = vsel %vm5294_vm9, %v5298_v11, 0.0  ;;  %4422 = vmatprep.subr.bf16.mxu1 %v4911_v40  ;;  %v1043_v2 = vpack.c.bf16 %v923_v0, %v970_v28  ;;  %vm5410_vm12 = vcmp.ne.s32.totalorder %v704_v20, 15  ;;  %v976_v5 = vld [vmem:[#allocation2 + $0x29] sm:$0xff]  ;;  %v981_v11 = vld [vmem:[#allocation2 + $0x51] sm:$0xff]  ;;  %v978_v12 = vld [vmem:[#allocation2 + $0x39] sm:$0xff]  ;;  %v6129_v28 = vmov 0 }
  0x27   : > { %4370 = vmatprep.subr.bf16.mxu0 %v4901_v39  ;;  %v1360_v9 = vpack.c.bf16 %v1025_v36, %v976_v5  ;;  %v980_v15 = vld [vmem:[#allocation2 + $0x49] sm:$0xff]  ;;  %v1029_v24 = vsel %vm5414_vm13, %v981_v11, 0.0  ;;  %v6130_v28 = vsel %vm5432_vm14, 4294967295, %v6129_v28  ;;  %vm5437_vm15 = vcmp.ne.s32.totalorder %v746_v13, 15  ;;  %v982_v32 = vld [vmem:[#allocation2 + $0x59] sm:$0xff] }
  0x28   : > { %v6131_v31 = vmov 0  ;;  %v984_v21 = vld [vmem:[#allocation2 + $0x69] sm:$0xff]  ;;  %v6133_v36 = vmov 0  ;;  %v4934_v46 = vld [vmem:[%s6052_s9 + $0x18] sm:$0xff]  }
  0x29   : > { %4355 = vmatmul.mubr.msk.bf16.gmra.mrb[4].mxu0 %vm6069_vm0, %v1055_v44  ;;  %v1038_v44 = vpack.c.bf16 %v913_v42, %v960_v4  ;;  %4423 = vmatpush3.bf16.msra.mxu1 %v4911_v40  ;;  %v6127_v4 = vmov 0  ;;  %v6132_v31 = vsel %vm5437_vm15, 4294967295, %v6131_v31  ;;  %v4913_v41 = vld [vmem:[%s6049_s6 + $0x30] sm:$0xff]   ;;  %v4914_v42 = vld [vmem:[%s6049_s6 + $0x38] sm:$0xff]  }
  0x2a   : > { %4358 = vmatprep.mubr.msk.bf16.mxu0 %vm6069_vm0, %v1056_v49  ;;  %4371 = vmatpush3.bf16.msra.mxu0 %v4901_v39  ;;  %v1036_v39 = vpack.c.bf16 %v909_v35, %v956_v1  ;;  %v917_v49 = vld [vmem:[#allocation2 + $0x4f] sm:$0xff]  ;;  %v6128_v4 = vsel %vm5414_vm13, 4294967295, %v6127_v4 }
  0x2b   : > { %4372 = vmatprep.subr.bf16.mxu0 %v4902_v56  ;;  %4424 = vmatprep.subr.bf16.mxu1 %v4912_v43  ;;  %v1040_v55 = vpack.c.bf16 %v917_v49, %v964_v6  ;;  %v972_v1 = vld [vmem:[#allocation2 + $0x9] sm:$0xff]  ;;  %v4935_v49 = vld [vmem:[%s6052_s9 + $0x20] sm:$0xff]  }
  0x2c   : > { %v1358_v60 = vpack.c.bf16 %v1021_v29, %v972_v1  ;;  %v983_v29 = vld [vmem:[#allocation2 + $0x61] sm:$0xff] }
  0x2d   : > { %4425 = vmatpush3.bf16.msra.mxu1 %v4912_v43  ;;  %v1031_v20 = vsel %vm5432_vm14, %v983_v29, 0.0  ;;  %v4915_v43 = vld [vmem:[%s6048_s5] sm:$0xff]  }
  0x2e   : > { %4373 = vmatpush3.bf16.msra.mxu0 %v4902_v56  ;;  %v919_v56 = vld [vmem:[#allocation2 + $0x5f] sm:$0xff]  ;;  %v1363_v35 = vpack.c.bf16 %v1031_v20, %v982_v32  ;;  %4426 = vmatprep.subr.bf16.mxu1 %v4913_v41 }
  0x2f   : > { %4390 = vmatprep.subr.bf16.mxu0 %v5273_v3  ;;  %v1041_v53 = vpack.c.bf16 %v919_v56, %v966_v7  ;;  %v979_v7 = vld [vmem:[#allocation2 + $0x41] sm:$0xff] }
  0x30   : > { %v1027_v14 = vsel %vm5410_vm12, %v979_v7, 0.0 }
  0x31   : > { %4359 = vmatmul.mubr.msk.bf16.gmra.mrb[8].mxu0 %vm6069_vm0, %v1057_v27  ;;  %v1361_v26 = vpack.c.bf16 %v1027_v14, %v978_v12  ;;  %v1362_v27 = vpack.c.bf16 %v1029_v24, %v980_v15  ;;  %4427 = vmatpush3.bf16.msra.mxu1 %v4913_v41  ;;  %v4916_v14 = vld [vmem:[%s6048_s5 + $0x8] sm:$0xff]  }
  0x32   : > { %4362 = vmatprep.mubr.msk.bf16.mxu0 %vm6069_vm0, %v1058_v30  ;;  %v650_v30 = vadd.s32 120, %v5167_v19  ;;  %4428 = vmatprep.subr.bf16.mxu1 %v4914_v42 }
  0x34   : > { %v760_v34 = vand.u32 15, %v650_v30 }
  0x35   : > { %4429 = vmatpush3.bf16.msra.mxu1 %v4914_v42 }
  0x36   : > { %vm5447_vm13 = vcmp.ne.s32.totalorder %v760_v34, 15  ;;  %4446 = vmatprep.subr.bf16.mxu1 %v4915_v43 }
  0x37   : > { %v6134_v36 = vsel %vm5447_vm13, 4294967295, %v6133_v36 }
  0x39   : > { %4363 = vmatmul.mubr.msk.bf16.gmra.mrb[12].mxu0 %vm6069_vm0, %v1059_v38  ;;  %v986_v38 = vld [vmem:[#allocation2 + $0x79] sm:$0xff] }
  0x3a   : > { %4374 = vmatprep.mubr.msk.bf16.mxu0 %vm6069_vm0, %v1036_v39  ;;  %v1035_v39 = vsel %vm5447_vm13, %v987_v37, 0.0 }
  0x3b   : > { %v1365_v40 = vpack.c.bf16 %v1035_v39, %v986_v38 }
  0x41   : > { %4375 = vmatmul.mubr.msk.bf16.vlgmr.msra.gmra.mrb[0].mxu0 %vm6069_vm0, %v1037_v22  ;;  %v4931_v22 = vld [vmem:[%s6052_s9] sm:$0xff]  }
  0x42   : > { %4391 = vmatpush3.bf16.msra.mxu0 %v5273_v3  ;;  %4378 = vmatprep.mubr.msk.bf16.mxu0 %vm6069_vm0, %v1038_v44  ;;  %v974_v3 = vld [vmem:[#allocation2 + $0x19] sm:$0xff]  ;;  %v4933_v44 = vld [vmem:[%s6052_s9 + $0x10] sm:$0xff]  }
  0x43   : > { %4392 = vmatprep.subr.bf16.mxu0 %v4904_v23  ;;  %v1359_v6 = vpack.c.bf16 %v1023_v17, %v974_v3  ;;  %v985_v17 = vld [vmem:[#allocation2 + $0x71] sm:$0xff] }
  0x44   : > { %v1033_v33 = vsel %vm5437_vm15, %v985_v17, 0.0  ;;  %v4917_v17 = vld [vmem:[%s6048_s5 + $0x10] sm:$0xff]  }
  0x45   : > { %v1364_v19 = vpack.c.bf16 %v1033_v33, %v984_v21 }
  0x46   : > { %4393 = vmatpush3.bf16.msra.mxu0 %v4904_v23  ;;  %v4932_v23 = vld [vmem:[%s6052_s9 + $0x8] sm:$0xff]  }
  0x47   : > { %4394 = vmatprep.subr.bf16.mxu0 %v4905_v50 }
  0x49   : > { %4379 = vmatmul.mubr.msk.bf16.gmra.mrb[4].mxu0 %vm6069_vm0, %v1039_v51  ;;  %v5486_v51 = vld [vmem:[%s6135_s28] ss:$0 sm:$0xff] }
  0x4a   : > { %4382 = vmatprep.mubr.msk.bf16.mxu0 %vm6069_vm0, %v1040_v55  ;;  %4395 = vmatpush3.bf16.msra.mxu0 %v4905_v50  ;;  %v4936_v50 = vld [vmem:[%s6052_s9 + $0x28] sm:$0xff]  }
  0x4b   : > { %4396 = vmatprep.subr.bf16.mxu0 %v4906_v54 }
  0x4e   : > { %4397 = vmatpush3.bf16.msra.mxu0 %v4906_v54 }
  0x4f   : > { %4510 = vmatprep.subr.bf16.mxu0 %v4931_v22 }
  0x51   : > { %4383 = vmatmul.mubr.msk.bf16.gmra.mrb[8].mxu0 %vm6069_vm0, %v1041_v53 }
  0x52   : > { %4386 = vmatprep.mubr.msk.bf16.mxu0 %vm6069_vm0, %v1042_v58 }
  0x59   : > { %4387 = vmatmul.mubr.msk.bf16.gmra.mrb[12].mxu0 %vm6069_vm0, %v1043_v2 }
  0x5a   : > { %4398 = vmatprep.mubr.msk.bf16.mxu0 %vm6069_vm0, %v1358_v60 }
  0x61   : > { %4399 = vmatmul.mubr.msk.bf16.vlgmr.msra.gmra.mrb[0].mxu0 %vm6069_vm0, %v1359_v6 }
  0x62   : > { %4402 = vmatprep.mubr.msk.bf16.mxu0 %vm6069_vm0, %v1360_v9  ;;  %4511 = vmatpush3.bf16.msra.mxu0 %v4931_v22 }
  0x63   : > { %4512 = vmatprep.subr.bf16.mxu0 %v4932_v23 }
  0x66   : > { %4513 = vmatpush3.bf16.msra.mxu0 %v4932_v23  ;;  %v4919_v23 = vld [vmem:[%s6048_s5 + $0x20] sm:$0xff]  }
  0x67   : > { %4514 = vmatprep.subr.bf16.mxu0 %v4933_v44 }
  0x69   : > { %4403 = vmatmul.mubr.msk.bf16.gmra.mrb[4].mxu0 %vm6069_vm0, %v1361_v26 }
  0x6a   : > { %4406 = vmatprep.mubr.msk.bf16.mxu0 %vm6069_vm0, %v1362_v27  ;;  %4515 = vmatpush3.bf16.msra.mxu0 %v4933_v44 }
  0x6b   : > { %4516 = vmatprep.subr.bf16.mxu0 %v4934_v46 }
  0x6e   : > { %4517 = vmatpush3.bf16.msra.mxu0 %v4934_v46 }
  0x6f   : > { %4518 = vmatprep.subr.bf16.mxu0 %v4935_v49 }
  0x71   : > { %4407 = vmatmul.mubr.msk.bf16.gmra.mrb[8].mxu0 %vm6069_vm0, %v1363_v35 }
  0x72   : > { %4410 = vmatprep.mubr.msk.bf16.mxu0 %vm6069_vm0, %v1364_v19  ;;  %4519 = vmatpush3.bf16.msra.mxu0 %v4935_v49  ;;  %v4918_v19 = vld [vmem:[%s6048_s5 + $0x18] sm:$0xff]  }
  0x73   : > { %4520 = vmatprep.subr.bf16.mxu0 %v4936_v50 }
  0x76   : > { %4521 = vmatpush3.bf16.msra.mxu0 %v4936_v50 }
  0x79   : > { %4411 = vmatmul.mubr.msk.bf16.gmra.mrb[12].mxu0 %vm6069_vm0, %v1365_v40  ;;  %vm4991_vm0 = vmmov 1  }
  0x7a   : > { %vm5525_vm13 = vmpackc.low %vm4991_vm0, %vm5215_vm1 }
  0x7b   : > { %vm5540_vm1 = vmpackc.low %vm4991_vm0, %vm5221_vm2 }
 0x134   : > { %v4400_v54 = vpop.f32.mrb[0].mxu0 }
 0x135   : > { %v1544_v55 = vadd.f32 %v4400_v54, %v5486_v51  ;;  %v1456_v56 = vpop.f32.mrb[1].mxu0 }
 0x136   : > { %v1542_v61 = vadd.f32 %v5486_v51, %v1456_v56  ;;  %v4401_v53 = vpop.f32.mrb[2].mxu0  ;;  %v4920_v56 = vld [vmem:[%s6048_s5 + $0x28] sm:$0xff]  }
 0x137   : > { %v1560_v58 = vmax.f32 %v1544_v55, 0.0  ;;  %v1545_v0 = vadd.f32 %v4401_v53, %v5486_v51  ;;  %v1459_v1 = vpop.f32.mrb[3].mxu0 }
 0x138   : > { %v1558_v2 = vmax.f32 %v1542_v61, 0.0  ;;  %v1543_v60 = vadd.f32 %v5486_v51, %v1459_v1 }
 0x139   : > { %1576 = vst [vmem:[#allocation3 + $0x18] sm:$0xff] %v1560_v58  ;;  %v1561_v3 = vmax.f32 %v1545_v0, 0.0 }
 0x13a   : > { %1574 = vst [vmem:[#allocation3 + $0x8] sm:$0xff] %v1558_v2  ;;  %v1559_v5 = vmax.f32 %v1543_v60, 0.0 }
 0x13b   : > { %1577 = vst [vmem:[#allocation3 + $0x20] sm:$0xff] %v1561_v3  ;;  %v1679_v6 = vpack.c.bf16 %v1561_v3, %v1560_v58 }
 0x13c   : > { %1575 = vst [vmem:[#allocation3 + $0x10] sm:$0xff] %v1559_v5  ;;  %v4404_v7 = vpop.f32.mrb[4].mxu0  ;;  %v1678_v9 = vpack.c.bf16 %v1559_v5, %v1558_v2  ;;  %v4921_v5 = vld [vmem:[%s6048_s5 + $0x30] sm:$0xff]  }
 0x13d   : > { %v1548_v11 = vadd.f32 %v4404_v7, %v5486_v51  ;;  %v1472_v12 = vpop.f32.mrb[5].mxu0 }
 0x13e   : > { %v1546_v15 = vadd.f32 %v5486_v51, %v1472_v12  ;;  %v4405_v24 = vpop.f32.mrb[6].mxu0  ;;  %4430 = vmatprep.mubr.bf16.mxu1 %v1678_v9 }
 0x13f   : > { %v1564_v25 = vmax.f32 %v1548_v11, 0.0  ;;  %v1549_v13 = vadd.f32 %v4405_v24, %v5486_v51  ;;  %v1475_v26 = vpop.f32.mrb[7].mxu0  ;;  %4431 = vmatmul.mubr.bf16.vlgmr.msra.gmra.mrb[0].mxu1 %v1679_v6  ;;  %v4923_v24 = vld [vmem:[%s6050_s7] sm:$0xff]  }
 0x140   : > { %v1562_v27 = vmax.f32 %v1546_v15, 0.0  ;;  %v1547_v29 = vadd.f32 %v5486_v51, %v1475_v26  ;;  %4447 = vmatpush3.bf16.msra.mxu1 %v4915_v43 }
 0x141   : > { %1580 = vst [vmem:[#allocation3 + $0x38] sm:$0xff] %v1564_v25  ;;  %v1565_v30 = vmax.f32 %v1549_v13, 0.0  ;;  %4448 = vmatprep.subr.bf16.mxu1 %v4916_v14  ;;  %v1590_v12 = vld [vmem:[#allocation3 + $0x7] sm:$0xff] }
 0x142   : > { %1578 = vst [vmem:[#allocation3 + $0x28] sm:$0xff] %v1562_v27  ;;  %v1563_v32 = vmax.f32 %v1547_v29, 0.0  ;;  %v1593_v13 = vld [vmem:[#allocation3 + $0x1f] sm:$0xff] }
 0x143   : > { %1581 = vst [vmem:[#allocation3 + $0x40] sm:$0xff] %v1565_v30  ;;  %v1681_v20 = vpack.c.bf16 %v1565_v30, %v1564_v25  ;;  %v1591_v9 = vld [vmem:[#allocation3 + $0xf] sm:$0xff]  ;;  %v1592_v25 = vld [vmem:[#allocation3 + $0x17] sm:$0xff] }
 0x144   : > { %1579 = vst [vmem:[#allocation3 + $0x30] sm:$0xff] %v1563_v32  ;;  %v1680_v21 = vpack.c.bf16 %v1563_v32, %v1562_v27  ;;  %v4408_v33 = vpop.f32.mrb[8].mxu0  ;;  %4449 = vmatpush3.bf16.msra.mxu1 %v4916_v14  ;;  %v4922_v14 = vld [vmem:[%s6048_s5 + $0x38] sm:$0xff]   ;;  %v3957_v15 = vpack.c.bf16 %v1591_v9, %v1590_v12  ;;  %v6138_v27 = vmov 0  ;;  %v3960_v29 = vpack.c.bf16 %v1593_v13, %v1592_v25  ;;  %v4924_v32 = vld [vmem:[%s6050_s7 + $0x8] sm:$0xff]  }
 0x145   : > { %v1552_v34 = vadd.f32 %v4408_v33, %v5486_v51  ;;  %v1488_v35 = vpop.f32.mrb[9].mxu0  ;;  %4450 = vmatprep.subr.bf16.mxu1 %v4917_v17  ;;  %v6139_v27 = vsel %vm5540_vm1, 4294967295, %v6138_v27  ;;  %v6154_v12 = vmov 0 }
 0x146   : > { %v1550_v37 = vadd.f32 %v5486_v51, %v1488_v35  ;;  %v4409_v38 = vpop.f32.mrb[10].mxu0  ;;  %4434 = vmatprep.mubr.bf16.mxu1 %v1680_v21  ;;  %v4925_v21 = vld [vmem:[%s6050_s7 + $0x10] sm:$0xff]  }
 0x147   : > { %v1568_v39 = vmax.f32 %v1552_v34, 0.0  ;;  %v1553_v40 = vadd.f32 %v4409_v38, %v5486_v51  ;;  %v1491_v41 = vpop.f32.mrb[11].mxu0  ;;  %4435 = vmatmul.mubr.bf16.gmra.mrb[4].mxu1 %v1681_v20 }
 0x148   : > { %v1566_v42 = vmax.f32 %v1550_v37, 0.0  ;;  %v1551_v43 = vadd.f32 %v5486_v51, %v1491_v41  ;;  %4451 = vmatpush3.bf16.msra.mxu1 %v4917_v17  ;;  %v6140_v17 = vmov 0 }
 0x149   : > { %1584 = vst [vmem:[#allocation3 + $0x58] sm:$0xff] %v1568_v39  ;;  %v1569_v22 = vmax.f32 %v1553_v40, 0.0  ;;  %4452 = vmatprep.subr.bf16.mxu1 %v4918_v19  ;;  %v1594_v30 = vld [vmem:[#allocation3 + $0x27] sm:$0xff] }
 0x14a   : > { %1582 = vst [vmem:[#allocation3 + $0x48] sm:$0xff] %v1566_v42  ;;  %v1567_v44 = vmax.f32 %v1551_v43, 0.0  ;;  %v1597_v34 = vld [vmem:[#allocation3 + $0x3f] sm:$0xff]  ;;  %v4926_v40 = vld [vmem:[%s6050_s7 + $0x18] sm:$0xff]  }
 0x14b   : > { %1585 = vst [vmem:[#allocation3 + $0x60] sm:$0xff] %v1569_v22  ;;  %v1683_v46 = vpack.c.bf16 %v1569_v22, %v1568_v39  ;;  %v1595_v26 = vld [vmem:[#allocation3 + $0x2f] sm:$0xff]  ;;  %v1596_v33 = vld [vmem:[#allocation3 + $0x37] sm:$0xff]  ;;  %v6144_v39 = vmov 0 }
 0x14c   : > { %1583 = vst [vmem:[#allocation3 + $0x50] sm:$0xff] %v1567_v44  ;;  %v1682_v49 = vpack.c.bf16 %v1567_v44, %v1566_v42  ;;  %v4412_v50 = vpop.f32.mrb[12].mxu0  ;;  %4453 = vmatpush3.bf16.msra.mxu1 %v4918_v19  ;;  %v3963_v20 = vpack.c.bf16 %v1595_v26, %v1594_v30  ;;  %v6142_v19 = vmov 0  ;;  %v3966_v37 = vpack.c.bf16 %v1597_v34, %v1596_v33  ;;  %v4927_v42 = vld [vmem:[%s6050_s7 + $0x20] sm:$0xff]  }
 0x14d   : > { %v1556_v54 = vadd.f32 %v4412_v50, %v5486_v51  ;;  %v1504_v55 = vpop.f32.mrb[13].mxu0  ;;  %4454 = vmatprep.subr.bf16.mxu1 %v4919_v23  ;;  %v6146_v44 = vmov 0  ;;  %v6148_v50 = vmov 0  ;;  %v1627_v9 = vld [vmem:[#allocation3 + $0x31] sm:$0xff]  ;;  %v6158_v30 = vmov 0 }
 0x14e   : > { %v1554_v61 = vadd.f32 %v5486_v51, %v1504_v55  ;;  %v4413_v53 = vpop.f32.mrb[14].mxu0  ;;  %4438 = vmatprep.mubr.bf16.mxu1 %v1682_v49 }
 0x14f   : > { %v1572_v58 = vmax.f32 %v1556_v54, 0.0  ;;  %v1557_v0 = vadd.f32 %v4413_v53, %v5486_v51  ;;  %v1507_v1 = vpop.f32.mrb[15].mxu0  ;;  %4439 = vmatmul.mubr.bf16.gmra.mrb[8].mxu1 %v1683_v46  ;;  %v4928_v54 = vld [vmem:[%s6050_s7 + $0x28] sm:$0xff]  }
 0x150   : > { %v1570_v2 = vmax.f32 %v1554_v61, 0.0  ;;  %v1555_v60 = vadd.f32 %v5486_v51, %v1507_v1  ;;  %4455 = vmatpush3.bf16.msra.mxu1 %v4919_v23  ;;  %v6136_v51 = vmov 0  ;;  %v6150_v1 = vmov 0 }
 0x151   : > { %1588 = vst [vmem:[#allocation3 + $0x78] sm:$0xff] %v1572_v58  ;;  %v1573_v3 = vmax.f32 %v1557_v0, 0.0  ;;  %4456 = vmatprep.subr.bf16.mxu1 %v4920_v56  ;;  %v6137_v51 = vsel %vm5525_vm13, 4294967295, %v6136_v51  ;;  %v1598_v38 = vld [vmem:[#allocation3 + $0x47] sm:$0xff]  ;;  %v1623_v0 = vld [vmem:[#allocation3 + $0x11] sm:$0xff] }
 0x152   : > { %1586 = vst [vmem:[#allocation3 + $0x68] sm:$0xff] %v1570_v2  ;;  %v1571_v6 = vmax.f32 %v1555_v60, 0.0  ;;  %v1601_v22 = vld [vmem:[#allocation3 + $0x5f] sm:$0xff]  ;;  %v6152_v60 = vmov 0 }
 0x153   : > { %1589 = vst [vmem:[#allocation3 + $0x80] sm:$0xff] %v1573_v3  ;;  %v1685_v7 = vpack.c.bf16 %v1573_v3, %v1572_v58  ;;  %v1599_v35 = vld [vmem:[#allocation3 + $0x4f] sm:$0xff]  ;;  %v1600_v43 = vld [vmem:[#allocation3 + $0x57] sm:$0xff]  ;;  %v1629_v25 = vld [vmem:[#allocation3 + $0x41] sm:$0xff] }
 0x154   : > { %1587 = vst [vmem:[#allocation3 + $0x70] sm:$0xff] %v1571_v6  ;;  %v1684_v11 = vpack.c.bf16 %v1571_v6, %v1570_v2  ;;  %4457 = vmatpush3.bf16.msra.mxu1 %v4920_v56  ;;  %v3969_v41 = vpack.c.bf16 %v1599_v35, %v1598_v38  ;;  %v3972_v46 = vpack.c.bf16 %v1601_v22, %v1600_v43  ;;  %v4929_v56 = vld [vmem:[%s6050_s7 + $0x30] sm:$0xff]   ;;  %v1622_v58 = vld [vmem:[#allocation3 + $0x9] sm:$0xff]  ;;  %v1631_v26 = vld [vmem:[#allocation3 + $0x51] sm:$0xff]  ;;  %v6163_v38 = vmov 0 }
 0x155   : > { %4458 = vmatprep.subr.bf16.mxu1 %v4921_v5  ;;  %v4930_v3 = vld [vmem:[%s6050_s7 + $0x38] sm:$0xff]  }
 0x156   : > { %4442 = vmatprep.mubr.bf16.mxu1 %v1684_v11  ;;  %v1625_v6 = vld [vmem:[#allocation3 + $0x21] sm:$0xff]  ;;  %v1624_v11 = vld [vmem:[#allocation3 + $0x19] sm:$0xff]  ;;  %v1630_v13 = vld [vmem:[#allocation3 + $0x49] sm:$0xff] }
 0x157   : > { %4443 = vmatmul.mubr.bf16.gmra.mrb[12].mxu1 %v1685_v7  ;;  %v1626_v7 = vld [vmem:[#allocation3 + $0x29] sm:$0xff] }
 0x158   : > { %4459 = vmatpush3.bf16.msra.mxu1 %v4921_v5  ;;  %4462 = vmatprep.mubr.msk.bf16.mxu1 %vm5525_vm13, %v3957_v15  ;;  %vm5547_vm13 = vmpackc.low %vm4991_vm0, %vm5225_vm3  ;;  %v3989_v5 = vpack.c.bf16 %v1623_v0, %v1622_v58  ;;  %v6156_v15 = vmov 0  ;;  %v4012_v58 = vld [vmem:[%s6051_s8] ss:$0 sm:$0xff] }
 0x159   : > { %4460 = vmatprep.subr.bf16.mxu1 %v4922_v14  ;;  %v6141_v17 = vsel %vm5547_vm13, 4294967295, %v6140_v17  ;;  %vm5564_vm3 = vmpackc.low %vm4991_vm0, %vm5235_vm4  ;;  %v1602_v49 = vld [vmem:[#allocation3 + $0x67] sm:$0xff] }
 0x15a   : > { %v6143_v19 = vsel %vm5564_vm3, 4294967295, %v6142_v19  ;;  %v1605_v53 = vld [vmem:[#allocation3 + $0x7f] sm:$0xff] }
 0x15b   : > { %v1603_v23 = vld [vmem:[#allocation3 + $0x6f] sm:$0xff]  ;;  %v1604_v61 = vld [vmem:[#allocation3 + $0x77] sm:$0xff]  ;;  %v1633_v33 = vld [vmem:[#allocation3 + $0x61] sm:$0xff] }
 0x15c   : > { %4461 = vmatpush3.bf16.msra.mxu1 %v4922_v14  ;;  %v3975_v55 = vpack.c.bf16 %v1603_v23, %v1602_v49  ;;  %v3978_v2 = vpack.c.bf16 %v1605_v53, %v1604_v61  ;;  %v3992_v14 = vpack.c.bf16 %v1625_v6, %v1624_v11  ;;  %v1634_v34 = vld [vmem:[#allocation3 + $0x69] sm:$0xff]  ;;  %v1635_v35 = vld [vmem:[#allocation3 + $0x71] sm:$0xff]  ;;  %v1636_v43 = vld [vmem:[#allocation3 + $0x79] sm:$0xff]  ;;  %v6168_v23 = vmov 0 }
 0x15d   : > { %4478 = vmatprep.subr.bf16.mxu1 %v4923_v24  ;;  %v1637_v22 = vld [vmem:[#allocation3 + $0x81] sm:$0xff] }
 0x15e   : > { %v4937_v49 = vld [vmem:[%s6052_s9 + $0x30] sm:$0xff]   ;;  %v4942_v53 = vld [vmem:[%s6054_s11 + $0x18] sm:$0xff]  }
 0x15f   : > { %4463 = vmatmul.mubr.msk.bf16.vlgmr.msra.gmra.mrb[0].mxu1 %vm5540_vm1, %v3960_v29  ;;  %vm5588_vm1 = vmpackc.low %vm4991_vm0, %vm5250_vm6  ;;  %v1628_v29 = vld [vmem:[#allocation3 + $0x39] sm:$0xff]  ;;  %4522 = vmatprep.subr.bf16.mxu0 %v4937_v49 }
 0x160   : > { %4466 = vmatprep.mubr.msk.bf16.mxu1 %vm5547_vm13, %v3963_v20  ;;  %4479 = vmatpush3.bf16.msra.mxu1 %v4923_v24  ;;  %vm5571_vm13 = vmpackc.low %vm4991_vm0, %vm5244_vm5  ;;  %v6147_v44 = vsel %vm5588_vm1, 4294967295, %v6146_v44  ;;  %v3995_v24 = vpack.c.bf16 %v1627_v9, %v1626_v7  ;;  %v6161_v20 = vmov 0  ;;  %v4941_v61 = vld [vmem:[%s6054_s11 + $0x10] sm:$0xff]  }
 0x161   : > { %4480 = vmatprep.subr.bf16.mxu1 %v4924_v32  ;;  %v6145_v39 = vsel %vm5571_vm13, 4294967295, %v6144_v39  ;;  %4523 = vmatpush3.bf16.msra.mxu0 %v4937_v49 }
 0x164   : > { %4481 = vmatpush3.bf16.msra.mxu1 %v4924_v32  ;;  %v3998_v32 = vpack.c.bf16 %v1629_v25, %v1628_v29 }
 0x165   : > { %4482 = vmatprep.subr.bf16.mxu1 %v4925_v21 }
 0x167   : > { %4467 = vmatmul.mubr.msk.bf16.gmra.mrb[4].mxu1 %vm5564_vm3, %v3966_v37  ;;  %vm5612_vm3 = vmpackc.low %vm4991_vm0, %vm5288_vm8  ;;  %v1632_v37 = vld [vmem:[#allocation3 + $0x59] sm:$0xff] }
 0x168   : > { %4470 = vmatprep.mubr.msk.bf16.mxu1 %vm5571_vm13, %v3969_v41  ;;  %4483 = vmatpush3.bf16.msra.mxu1 %v4925_v21  ;;  %vm5595_vm13 = vmpackc.low %vm4991_vm0, %vm5257_vm7  ;;  %v6151_v1 = vsel %vm5612_vm3, 4294967295, %v6150_v1  ;;  %v4001_v21 = vpack.c.bf16 %v1631_v26, %v1630_v13  ;;  %v6165_v41 = vmov 0 }
 0x169   : > { %4484 = vmatprep.subr.bf16.mxu1 %v4926_v40  ;;  %v6149_v50 = vsel %vm5595_vm13, 4294967295, %v6148_v50 }
 0x16c   : > { %4485 = vmatpush3.bf16.msra.mxu1 %v4926_v40  ;;  %v4004_v40 = vpack.c.bf16 %v1633_v33, %v1632_v37 }
 0x16d   : > { %4486 = vmatprep.subr.bf16.mxu1 %v4927_v42 }
 0x16f   : > { %4471 = vmatmul.mubr.msk.bf16.gmra.mrb[8].mxu1 %vm5588_vm1, %v3972_v46  ;;  %vm5633_vm1 = vmpackc.low %vm5308_vm10, %vm4991_vm0  ;;  %v4010_v46 = vpack.c.bf16 %v1637_v22, %v1636_v43 }
 0x170   : > { %4474 = vmatprep.mubr.msk.bf16.mxu1 %vm5595_vm13, %v3975_v55  ;;  %4487 = vmatpush3.bf16.msra.mxu1 %v4927_v42  ;;  %vm5619_vm13 = vmpackc.low %vm5294_vm9, %vm4991_vm0  ;;  %v6155_v12 = vsel %vm5633_vm1, 4294967295, %v6154_v12  ;;  %v4007_v42 = vpack.c.bf16 %v1635_v35, %v1634_v34  ;;  %v4939_v55 = vld [vmem:[%s6054_s11] sm:$0xff]  }
 0x171   : > { %4488 = vmatprep.subr.bf16.mxu1 %v4928_v54  ;;  %v6153_v60 = vsel %vm5619_vm13, 4294967295, %v6152_v60 }
 0x174   : > { %4489 = vmatpush3.bf16.msra.mxu1 %v4928_v54  ;;  %v4938_v54 = vld [vmem:[%s6052_s9 + $0x38] sm:$0xff]  }
 0x175   : > { %4490 = vmatprep.subr.bf16.mxu1 %v4929_v56  ;;  %4524 = vmatprep.subr.bf16.mxu0 %v4938_v54 }
 0x176   : > { %4525 = vmatpush3.bf16.msra.mxu0 %v4938_v54 }
 0x177   : > { %4475 = vmatmul.mubr.msk.bf16.gmra.mrb[12].mxu1 %vm5612_vm3, %v3978_v2  ;;  %vm5640_vm3 = vmpackc.low %vm5340_vm11, %vm4991_vm0  ;;  %vm6160_vm11 = vnez %v6128_v4 }
 0x178   : > { %4491 = vmatpush3.bf16.msra.mxu1 %v4929_v56  ;;  %4494 = vmatprep.mubr.msk.bf16.mxu1 %vm5619_vm13, %v3989_v5  ;;  %v6157_v15 = vsel %vm5640_vm3, 4294967295, %v6156_v15  ;;  %vm5651_vm13 = vmpackc.low %vm5410_vm12, %vm4991_vm0  ;;  %v4940_v56 = vld [vmem:[%s6054_s11 + $0x8] sm:$0xff]  }
 0x179   : > { %4492 = vmatprep.subr.bf16.mxu1 %v4930_v3  ;;  %v6159_v30 = vsel %vm5651_vm13, 4294967295, %v6158_v30  ;;  %vm5658_vm10 = vmpackc.low %vm6160_vm11, %vm4991_vm0 }
 0x17a   : > { %v6162_v20 = vsel %vm5658_vm10, 4294967295, %v6161_v20 }
 0x17c   : > { %4493 = vmatpush3.bf16.msra.mxu1 %v4930_v3 }
 0x17d   : > { %4542 = vmatprep.subr.bf16.mxu1 %v4939_v55 }
 0x17f   : > { %4495 = vmatmul.mubr.msk.bf16.vlgmr.msra.gmra.mrb[0].mxu1 %vm5633_vm1, %v3992_v14  ;;  %vm5676_vm1 = vmpackc.low %vm5437_vm15, %vm4991_vm0 }
 0x180   : > { %4498 = vmatprep.mubr.msk.bf16.mxu1 %vm5640_vm3, %v3995_v24  ;;  %vm5669_vm3 = vmpackc.low %vm5432_vm14, %vm4991_vm0  ;;  %v6166_v41 = vsel %vm5676_vm1, 4294967295, %v6165_v41  ;;  %4543 = vmatpush3.bf16.msra.mxu1 %v4939_v55 }
 0x181   : > { %v6164_v38 = vsel %vm5669_vm3, 4294967295, %v6163_v38  ;;  %4544 = vmatprep.subr.bf16.mxu1 %v4940_v56 }
 0x184   : > { %4545 = vmatpush3.bf16.msra.mxu1 %v4940_v56 }
 0x185   : > { %4546 = vmatprep.subr.bf16.mxu1 %v4941_v61 }
 0x187   : > { %4499 = vmatmul.mubr.msk.bf16.gmra.mrb[4].mxu1 %vm5651_vm13, %v3998_v32 }
 0x188   : > { %4502 = vmatprep.mubr.msk.bf16.mxu1 %vm5658_vm10, %v4001_v21  ;;  %vm6167_vm10 = vnez %v6134_v36  ;;  %4547 = vmatpush3.bf16.msra.mxu1 %v4941_v61 }
 0x189   : > { %vm5687_vm13 = vmpackc.low %vm6167_vm10, %vm4991_vm0  ;;  %4548 = vmatprep.subr.bf16.mxu1 %v4942_v53  ;;  %vm6170_vm0 = vcmask 523264  }
 0x18a   : > { %v6169_v23 = vsel %vm5687_vm13, 4294967295, %v6168_v23  ;;  %vm6174_vm10 = vmmov %vm6170_vm0 }
 0x18b   : > { %vm6175_vm15 = vmmov %vm6170_vm0 }
 0x18c   : > { %4549 = vmatpush3.bf16.msra.mxu1 %v4942_v53  ;;  %vm6189_vm14 = vmmov %vm6170_vm0 }
 0x18f   : > { %4503 = vmatmul.mubr.msk.bf16.gmra.mrb[8].mxu1 %vm5669_vm3, %v4004_v40  ;;  %vm6173_vm3 = vmmov %vm6170_vm0 }
 0x190   : > { %4506 = vmatprep.mubr.msk.bf16.mxu1 %vm5676_vm1, %v4007_v42  ;;  %vm6172_vm1 = vmmov %vm6170_vm0 }
 0x197   : > { %4507 = vmatmul.mubr.msk.bf16.gmra.mrb[12].mxu1 %vm5687_vm13, %v4010_v46  ;;  %vm6171_vm13 = vmmov %vm6170_vm0 }
 0x252   : > { %v4496_v0 = vpop.f32.mrb[0].mxu1 }
 0x253   : > { %v2186_v2 = vadd.f32 %v4496_v0, %v4012_v58  ;;  %v2098_v3 = vpop.f32.mrb[1].mxu1 }
 0x254   : > { %v2184_v5 = vadd.f32 %v4012_v58, %v2098_v3  ;;  %v4497_v6 = vpop.f32.mrb[2].mxu1 }
 0x255   : > { %v2187_v7 = vadd.f32 %v4497_v6, %v4012_v58  ;;  %v2101_v9 = vpop.f32.mrb[3].mxu1  ;;  %v2202_v14 = vmax.f32 %v2186_v2, 0.0 }
 0x256   : > { %v2185_v11 = vadd.f32 %v4012_v58, %v2101_v9  ;;  %v2200_v25 = vmax.f32 %v2184_v5, 0.0 }
 0x257   : > { %v2203_v24 = vmax.f32 %v2187_v7, 0.0 }
 0x258   : > { %v2201_v13 = vmax.f32 %v2185_v11, 0.0 }
 0x259   : > { %v2217_v26 = vpack.c.bf16 %v2203_v24, %v2202_v14 }
 0x25a   : > { %v2216_v29 = vpack.c.bf16 %v2201_v13, %v2200_v25  ;;  %v4500_v32 = vpop.f32.mrb[4].mxu1 }
 0x25b   : > { %v2190_v21 = vadd.f32 %v4500_v32, %v4012_v58  ;;  %v2114_v33 = vpop.f32.mrb[5].mxu1 }
 0x25c   : > { %v2188_v34 = vadd.f32 %v4012_v58, %v2114_v33  ;;  %v4501_v35 = vpop.f32.mrb[6].mxu1  ;;  %4526 = vmatprep.mubr.bf16.mxu0 %v2216_v29 }
 0x25d   : > { %v2191_v37 = vadd.f32 %v4501_v35, %v4012_v58  ;;  %v2117_v40 = vpop.f32.mrb[7].mxu1  ;;  %4527 = vmatmul.mubr.bf16.vlgmr.msra.gmra.mrb[16].mxu0 %v2217_v26  ;;  %v2206_v43 = vmax.f32 %v2190_v21, 0.0 }
 0x25e   : > { %v2189_v42 = vadd.f32 %v4012_v58, %v2117_v40  ;;  %v2204_v46 = vmax.f32 %v2188_v34, 0.0 }
 0x25f   : > { %v2207_v22 = vmax.f32 %v2191_v37, 0.0 }
 0x260   : > { %v2205_v49 = vmax.f32 %v2189_v42, 0.0 }
 0x261   : > { %v2219_v54 = vpack.c.bf16 %v2207_v22, %v2206_v43 }
 0x262   : > { %v2218_v55 = vpack.c.bf16 %v2205_v49, %v2204_v46  ;;  %v4504_v56 = vpop.f32.mrb[8].mxu1  ;;  %v4943_v49 = vld [vmem:[%s6053_s10] sm:$0xff]  }
 0x263   : > { %v2194_v61 = vadd.f32 %v4504_v56, %v4012_v58  ;;  %v2130_v53 = vpop.f32.mrb[9].mxu1  ;;  %4566 = vmatprep.subr.bf16.mxu1 %v4943_v49  ;;  %v4954_v56 = vld [vmem:[%s6058_s15 + $0x18] sm:$0xff]  }
 0x264   : > { %v2192_v0 = vadd.f32 %v4012_v58, %v2130_v53  ;;  %v4505_v2 = vpop.f32.mrb[10].mxu1  ;;  %4530 = vmatprep.mubr.bf16.mxu0 %v2218_v55  ;;  %v4953_v55 = vld [vmem:[%s6058_s15 + $0x10] sm:$0xff]   ;;  %v4956_v53 = vld [vmem:[%s6058_s15 + $0x28] sm:$0xff]  }
 0x265   : > { %v2195_v3 = vadd.f32 %v4505_v2, %v4012_v58  ;;  %v2133_v5 = vpop.f32.mrb[11].mxu1  ;;  %4531 = vmatmul.mubr.bf16.gmra.mrb[20].mxu0 %v2219_v54  ;;  %v2210_v7 = vmax.f32 %v2194_v61, 0.0  ;;  %v4951_v54 = vld [vmem:[%s6058_s15] sm:$0xff]  }
 0x266   : > { %v2193_v6 = vadd.f32 %v4012_v58, %v2133_v5  ;;  %v2208_v11 = vmax.f32 %v2192_v0, 0.0  ;;  %4614 = vmatprep.subr.bf16.mxu0 %v4951_v54  ;;  %v4955_v61 = vld [vmem:[%s6058_s15 + $0x20] sm:$0xff]  }
 0x267   : > { %v2211_v9 = vmax.f32 %v2195_v3, 0.0  ;;  %4615 = vmatpush3.bf16.msra.mxu0 %v4951_v54 }
 0x268   : > { %v2209_v14 = vmax.f32 %v2193_v6, 0.0 }
 0x269   : > { %v2221_v24 = vpack.c.bf16 %v2211_v9, %v2210_v7  ;;  %v4944_v9 = vld [vmem:[%s6053_s10 + $0x8] sm:$0xff]  }
 0x26a   : > { %v2220_v25 = vpack.c.bf16 %v2209_v14, %v2208_v11  ;;  %v4508_v13 = vpop.f32.mrb[12].mxu1 }
 0x26b   : > { %v2198_v26 = vadd.f32 %v4508_v13, %v4012_v58  ;;  %v2146_v29 = vpop.f32.mrb[13].mxu1 }
 0x26c   : > { %v2196_v32 = vadd.f32 %v4012_v58, %v2146_v29  ;;  %v4509_v21 = vpop.f32.mrb[14].mxu1  ;;  %4534 = vmatprep.mubr.bf16.mxu0 %v2220_v25 }
 0x26d   : > { %v2199_v33 = vadd.f32 %v4509_v21, %v4012_v58  ;;  %v2149_v34 = vpop.f32.mrb[15].mxu1  ;;  %4535 = vmatmul.mubr.bf16.gmra.mrb[24].mxu0 %v2221_v24  ;;  %v2214_v37 = vmax.f32 %v2198_v26, 0.0  ;;  %v4945_v24 = vld [vmem:[%s6053_s10 + $0x10] sm:$0xff]  }
 0x26e   : > { %v2197_v35 = vadd.f32 %v4012_v58, %v2149_v34  ;;  %v2212_v42 = vmax.f32 %v2196_v32, 0.0  ;;  %v4952_v58 = vld [vmem:[%s6058_s15 + $0x8] sm:$0xff]   ;;  %v4946_v32 = vld [vmem:[%s6053_s10 + $0x18] sm:$0xff]   ;;  %v4947_v34 = vld [vmem:[%s6055_s12] sm:$0xff]  }
 0x26f   : > { %v2215_v40 = vmax.f32 %v2199_v33, 0.0  ;;  %4616 = vmatprep.subr.bf16.mxu0 %v4952_v58 }
 0x270   : > { %v2213_v43 = vmax.f32 %v2197_v35, 0.0  ;;  %4617 = vmatpush3.bf16.msra.mxu0 %v4952_v58 }
 0x271   : > { %v2223_v22 = vpack.c.bf16 %v2215_v40, %v2214_v37  ;;  %4618 = vmatprep.subr.bf16.mxu0 %v4953_v55 }
 0x272   : > { %v2222_v46 = vpack.c.bf16 %v2213_v43, %v2212_v42 }
 0x274   : > { %4538 = vmatprep.mubr.bf16.mxu0 %v2222_v46  ;;  %4619 = vmatpush3.bf16.msra.mxu0 %v4953_v55 }
 0x275   : > { %4539 = vmatmul.mubr.bf16.gmra.mrb[28].mxu0 %v2223_v22  ;;  %4620 = vmatprep.subr.bf16.mxu0 %v4954_v56 }
 0x278   : > { %4621 = vmatpush3.bf16.msra.mxu0 %v4954_v56 }
 0x279   : > { %4622 = vmatprep.subr.bf16.mxu0 %v4955_v61 }
 0x27c   : > { %4623 = vmatpush3.bf16.msra.mxu0 %v4955_v61 }
 0x27d   : > { %4624 = vmatprep.subr.bf16.mxu0 %v4956_v53 }
 0x280   : > { %4625 = vmatpush3.bf16.msra.mxu0 %v4956_v53 }
 0x330   : > { %v4528_v0 = vpop.f32.mrb[16].mxu0 }
 0x331   : > { %2387 = vst.msk [vmem:[#allocation4 + $0x18] sm:$0xff] %vm6170_vm0, %v4528_v0  ;;  %v2322_v2 = vpop.f32.mrb[17].mxu0 }
 0x332   : > { %2385 = vst.msk [vmem:[#allocation4 + $0x8] sm:$0xff] %vm6171_vm13, %v2322_v2  ;;  %v4529_v3 = vpop.f32.mrb[18].mxu0  ;;  %vm6179_vm13 = vmmov %vm6170_vm0 }
 0x333   : > { %2388 = vst.msk [vmem:[#allocation4 + $0x20] sm:$0xff] %vm6172_vm1, %v4529_v3  ;;  %v2482_v5 = vpack.c.bf16 %v4529_v3, %v4528_v0  ;;  %v2325_v6 = vpop.f32.mrb[19].mxu0  ;;  %vm6176_vm1 = vmmov %vm6170_vm0 }
 0x334   : > { %2386 = vst.msk [vmem:[#allocation4 + $0x10] sm:$0xff] %vm6173_vm3, %v2325_v6  ;;  %v2481_v7 = vpack.c.bf16 %v2325_v6, %v2322_v2  ;;  %vm6177_vm3 = vmmov %vm6170_vm0 }
 0x336   : > { %4550 = vmatprep.mubr.msk.bf16.mxu1 %vm6174_vm10, %v2481_v7  ;;  %vm6178_vm10 = vmmov %vm6170_vm0 }
 0x337   : > { %4551 = vmatmul.mubr.msk.bf16.vlgmr.msra.gmra.mrb[16].mxu1 %vm6175_vm15, %v2482_v5  ;;  %vm6180_vm15 = vmmov %vm6170_vm0 }
 0x338   : > { %v4532_v11 = vpop.f32.mrb[20].mxu0  ;;  %4567 = vmatpush3.bf16.msra.mxu1 %v4943_v49 }
 0x339   : > { %2391 = vst.msk [vmem:[#allocation4 + $0x38] sm:$0xff] %vm6170_vm0, %v4532_v11  ;;  %v2338_v14 = vpop.f32.mrb[21].mxu0  ;;  %4568 = vmatprep.subr.bf16.mxu1 %v4944_v9  ;;  %v2401_v22 = vld [vmem:[#allocation4 + $0x7] sm:$0xff] }
 0x33a   : > { %2389 = vst.msk [vmem:[#allocation4 + $0x28] sm:$0xff] %vm6176_vm1, %v2338_v14  ;;  %v4533_v25 = vpop.f32.mrb[22].mxu0  ;;  %vm6181_vm1 = vmmov %vm6170_vm0  ;;  %v2404_v6 = vld [vmem:[#allocation4 + $0x1f] sm:$0xff] }
 0x33b   : > { %2392 = vst.msk [vmem:[#allocation4 + $0x40] sm:$0xff] %vm6177_vm3, %v4533_v25  ;;  %v2484_v13 = vpack.c.bf16 %v4533_v25, %v4532_v11  ;;  %v2341_v26 = vpop.f32.mrb[23].mxu0  ;;  %vm6182_vm3 = vmmov %vm6170_vm0  ;;  %v2402_v55 = vld [vmem:[#allocation4 + $0xf] sm:$0xff]  ;;  %v2403_v0 = vld [vmem:[#allocation4 + $0x17] sm:$0xff] }
 0x33c   : > { %2390 = vst.msk [vmem:[#allocation4 + $0x30] sm:$0xff] %vm6178_vm10, %v2341_v26  ;;  %v2483_v29 = vpack.c.bf16 %v2341_v26, %v2338_v14  ;;  %4569 = vmatpush3.bf16.msra.mxu1 %v4944_v9  ;;  %vm6183_vm10 = vmmov %vm6170_vm0  ;;  %v2419_v3 = vsel %vm5221_vm2, %v2403_v0, 0.0  ;;  %v4948_v9 = vld [vmem:[%s6055_s12 + $0x8] sm:$0xff]   ;;  %v2435_v0 = vld [vmem:[#allocation4 + $0x19] sm:$0xff] }
 0x33d   : > { %4570 = vmatprep.subr.bf16.mxu1 %v4945_v24  ;;  %v2466_v7 = vpack.c.bf16 %v2404_v6, %v2419_v3  ;;  %vm6195_vm2 = vmmov %vm6170_vm0 }
 0x33e   : > { %4554 = vmatprep.mubr.msk.bf16.mxu1 %vm6179_vm13, %v2483_v29  ;;  %vm6184_vm13 = vmmov %vm6170_vm0 }
 0x33f   : > { %4555 = vmatmul.mubr.msk.bf16.gmra.mrb[20].mxu1 %vm6180_vm15, %v2484_v13  ;;  %vm6185_vm15 = vmmov %vm6170_vm0 }
 0x340   : > { %v4536_v21 = vpop.f32.mrb[24].mxu0  ;;  %4571 = vmatpush3.bf16.msra.mxu1 %v4945_v24 }
 0x341   : > { %2395 = vst.msk [vmem:[#allocation4 + $0x58] sm:$0xff] %vm6170_vm0, %v4536_v21  ;;  %v2354_v33 = vpop.f32.mrb[25].mxu0  ;;  %4572 = vmatprep.subr.bf16.mxu1 %v4946_v32  ;;  %v2405_v2 = vld [vmem:[#allocation4 + $0x27] sm:$0xff] }
 0x342   : > { %2393 = vst.msk [vmem:[#allocation4 + $0x48] sm:$0xff] %vm6181_vm1, %v2354_v33  ;;  %v4537_v35 = vpop.f32.mrb[26].mxu0  ;;  %vm6186_vm1 = vmmov %vm6170_vm0  ;;  %v2408_v26 = vld [vmem:[#allocation4 + $0x3f] sm:$0xff] }
 0x343   : > { %2396 = vst.msk [vmem:[#allocation4 + $0x60] sm:$0xff] %vm6182_vm3, %v4537_v35  ;;  %v2486_v37 = vpack.c.bf16 %v4537_v35, %v4536_v21  ;;  %v2357_v40 = vpop.f32.mrb[27].mxu0  ;;  %vm6187_vm3 = vmmov %vm6170_vm0  ;;  %v2406_v5 = vld [vmem:[#allocation4 + $0x2f] sm:$0xff]  ;;  %v2407_v14 = vld [vmem:[#allocation4 + $0x37] sm:$0xff] }
 0x344   : > { %2394 = vst.msk [vmem:[#allocation4 + $0x50] sm:$0xff] %vm6183_vm10, %v2357_v40  ;;  %v2485_v42 = vpack.c.bf16 %v2357_v40, %v2354_v33  ;;  %4573 = vmatpush3.bf16.msra.mxu1 %v4946_v32  ;;  %vm6188_vm10 = vnez %v6103_v45  ;;  %v4950_v32 = vld [vmem:[%s6055_s12 + $0x18] sm:$0xff]  }
 0x345   : > { %4590 = vmatprep.subr.bf16.mxu1 %v4947_v34  ;;  %v2417_v56 = vsel %vm6188_vm10, %v2401_v22, 0.0  ;;  %vm6196_vm10 = vmmov %vm6170_vm0  ;;  %v2434_v22 = vld [vmem:[#allocation4 + $0x11] sm:$0xff] }
 0x346   : > { %4558 = vmatprep.mubr.msk.bf16.mxu1 %vm6184_vm13, %v2485_v42  ;;  %vm6190_vm13 = vmmov %vm6170_vm0  ;;  %v2465_v53 = vpack.c.bf16 %v2402_v55, %v2417_v56  ;;  %v2450_v59 = vsel %vm5294_vm9, %v2434_v22, 0.0  ;;  %v2436_v55 = vld [vmem:[#allocation4 + $0x21] sm:$0xff]  ;;  %v2438_v56 = vld [vmem:[#allocation4 + $0x31] sm:$0xff] }
 0x347   : > { %4559 = vmatmul.mubr.msk.bf16.gmra.mrb[24].mxu1 %vm6185_vm15, %v2486_v37  ;;  %vm6191_vm15 = vmmov %vm6170_vm0 }
 0x348   : > { %v4540_v43 = vpop.f32.mrb[28].mxu0  ;;  %vm6204_vm9 = vmmov %vm6170_vm0 }
 0x349   : > { %2399 = vst.msk [vmem:[#allocation4 + $0x78] sm:$0xff] %vm6170_vm0, %v4540_v43  ;;  %v2370_v46 = vpop.f32.mrb[29].mxu0  ;;  %v2409_v24 = vld [vmem:[#allocation4 + $0x47] sm:$0xff] }
 0x34a   : > { %2397 = vst.msk [vmem:[#allocation4 + $0x68] sm:$0xff] %vm6186_vm1, %v2370_v46  ;;  %v4541_v49 = vpop.f32.mrb[30].mxu0  ;;  %vm6192_vm1 = vnez %v6107_v48  ;;  %v2423_v48 = vsel %vm5235_vm4, %v2407_v14, 0.0  ;;  %v2425_v13 = vsel %vm5244_vm5, %v2409_v24, 0.0  ;;  %v2412_v37 = vld [vmem:[#allocation4 + $0x5f] sm:$0xff]  ;;  %vm6197_vm4 = vmmov %vm6170_vm0 }
 0x34b   : > { %2400 = vst.msk [vmem:[#allocation4 + $0x80] sm:$0xff] %vm6187_vm3, %v4541_v49  ;;  %v2488_v54 = vpack.c.bf16 %v4541_v49, %v4540_v43  ;;  %v2373_v58 = vpop.f32.mrb[31].mxu0  ;;  %v2421_v45 = vsel %vm6192_vm1, %v2405_v2, 0.0  ;;  %vm6194_vm3 = vmmov %vm6170_vm0  ;;  %v2410_v25 = vld [vmem:[#allocation4 + $0x4f] sm:$0xff]  ;;  %v2468_v29 = vpack.c.bf16 %v2408_v26, %v2423_v48  ;;  %v2411_v33 = vld [vmem:[#allocation4 + $0x57] sm:$0xff] }
 0x34c   : > { %2398 = vst.msk [vmem:[#allocation4 + $0x70] sm:$0xff] %vm6189_vm14, %v2373_v58  ;;  %v2487_v61 = vpack.c.bf16 %v2373_v58, %v2370_v46  ;;  %v2467_v11 = vpack.c.bf16 %v2406_v5, %v2421_v45  ;;  %vm6193_vm14 = vmmov %vm6170_vm0  ;;  %v2469_v21 = vpack.c.bf16 %v2410_v25, %v2425_v13  ;;  %v2427_v57 = vsel %vm5250_vm6, %v2411_v33, 0.0  ;;  %v2433_v49 = vld [vmem:[#allocation4 + $0x9] sm:$0xff]  ;;  %v2440_v3 = vld [vmem:[#allocation4 + $0x41] sm:$0xff] }
 0x34d   : > { %v2470_v40 = vpack.c.bf16 %v2412_v37, %v2427_v57  ;;  %vm6198_vm5 = vmmov %vm6170_vm0  ;;  %v2787_v58 = vpack.c.bf16 %v2450_v59, %v2433_v49  ;;  %v2442_v5 = vld [vmem:[#allocation4 + $0x51] sm:$0xff]  ;;  %v2456_v45 = vsel %vm5410_vm12, %v2440_v3, 0.0  ;;  %v2441_v6 = vld [vmem:[#allocation4 + $0x49] sm:$0xff] }
 0x34e   : > { %4562 = vmatprep.mubr.msk.bf16.mxu1 %vm6190_vm13, %v2487_v61  ;;  %vm6199_vm6 = vmmov %vm6170_vm0  ;;  %vm6201_vm13 = vnez %v6122_v16  ;;  %v2458_v16 = vsel %vm6160_vm11, %v2442_v5, 0.0  ;;  %v2443_v48 = vld [vmem:[#allocation4 + $0x59] sm:$0xff]  ;;  %v5845_v33 = vld [vmem:[%s6061_s18 + $0x8] sm:$0xff]  }
 0x34f   : > { %4563 = vmatmul.mubr.msk.bf16.gmra.mrb[28].mxu1 %vm6191_vm15, %v2488_v54  ;;  %v2452_v61 = vsel %vm6201_vm13, %v2436_v55, 0.0  ;;  %vm6202_vm15 = vnez %v6124_v18  ;;  %v2791_v18 = vpack.c.bf16 %v2458_v16, %v2441_v6  ;;  %vm6205_vm1 = vmmov %vm6170_vm0  ;;  %v5860_v57 = vld [vmem:[%s6061_s18 + $0x18] sm:$0xff]   ;;  %v5882_v37 = vld [vmem:[%s6056_s13] ss:$0 sm:$0xff]  ;;  %vm6216_vm13 = vnez %v6145_v39 }
 0x350   : > { %4574 = vmatprep.mubr.msk.bf16.mxu1 %vm6170_vm0, %v2465_v53  ;;  %v2437_v53 = vld [vmem:[#allocation4 + $0x29] sm:$0xff]  ;;  %v2454_v8 = vsel %vm6202_vm15, %v2438_v56, 0.0  ;;  %v2788_v2 = vpack.c.bf16 %v2452_v61, %v2435_v0  ;;  %vm6208_vm11 = vmmov %vm6170_vm0  ;;  %vm6217_vm15 = vnez %v6147_v44  ;;  %v4974_v44 = vld [vmem:[%s6059_s16 + $0x38] sm:$0xff]  }
 0x351   : > { %v2413_v52 = vld [vmem:[#allocation4 + $0x67] sm:$0xff]  ;;  %v2789_v10 = vpack.c.bf16 %v2454_v8, %v2437_v53  ;;  %vm6209_vm12 = vmmov %vm6170_vm0  ;;  %v4973_v39 = vld [vmem:[%s6059_s16 + $0x30] sm:$0xff]  }
 0x352   : > { %v2429_v35 = vsel %vm5257_vm7, %v2413_v52, 0.0  ;;  %v2416_v54 = vld [vmem:[#allocation4 + $0x7f] sm:$0xff]  ;;  %vm6200_vm7 = vmmov %vm6170_vm0  ;;  %v5853_v52 = vld [vmem:[%s6061_s18 + $0x10] sm:$0xff]  }
 0x353   : > { %v2415_v43 = vld [vmem:[#allocation4 + $0x77] sm:$0xff]  ;;  %v2448_v13 = vld [vmem:[#allocation4 + $0x81] sm:$0xff] }
 0x354   : > { %v2431_v46 = vsel %vm5288_vm8, %v2415_v43, 0.0  ;;  %vm6203_vm8 = vmmov %vm6170_vm0  ;;  %v2446_v14 = vld [vmem:[#allocation4 + $0x71] sm:$0xff]  ;;  %v2447_v26 = vld [vmem:[#allocation4 + $0x79] sm:$0xff] }
 0x355   : > { %v2472_v62 = vpack.c.bf16 %v2416_v54, %v2431_v46 }
 0x357   : > { %4575 = vmatmul.mubr.msk.bf16.vlgmr.msra.gmra.mrb[16].mxu1 %vm6193_vm14, %v2466_v7  ;;  %v2439_v7 = vld [vmem:[#allocation4 + $0x39] sm:$0xff]  ;;  %vm6206_vm14 = vnez %v6130_v28  ;;  %v4957_v28 = vld [vmem:[%s6058_s15 + $0x30] sm:$0xff]  }
 0x358   : > { %4578 = vmatprep.mubr.msk.bf16.mxu1 %vm6194_vm3, %v2467_v11  ;;  %4591 = vmatpush3.bf16.msra.mxu1 %v4947_v34  ;;  %v2414_v34 = vld [vmem:[#allocation4 + $0x6f] sm:$0xff]  ;;  %v2444_v11 = vld [vmem:[#allocation4 + $0x61] sm:$0xff]  ;;  %vm6207_vm3 = vnez %v6132_v31  ;;  %v4958_v31 = vld [vmem:[%s6058_s15 + $0x38] sm:$0xff]  }
 0x359   : > { %4592 = vmatprep.subr.bf16.mxu1 %v4948_v9  ;;  %v2471_v42 = vpack.c.bf16 %v2414_v34, %v2429_v35  ;;  %v2460_v24 = vsel %vm6206_vm14, %v2444_v11, 0.0  ;;  %v2462_v63 = vsel %vm6207_vm3, %v2446_v14, 0.0  ;;  %4626 = vmatprep.subr.bf16.mxu0 %v4957_v28  ;;  %v5867_v34 = vld [vmem:[%s6061_s18 + $0x20] sm:$0xff]   ;;  %v5874_v35 = vld [vmem:[%s6061_s18 + $0x28] sm:$0xff]   ;;  %v4961_v11 = vld [vmem:[%s6057_s14 + $0x10] sm:$0xff]   ;;  %vm6222_vm14 = vnez %v6157_v15 }
 0x35a   : > { %v2792_v25 = vpack.c.bf16 %v2460_v24, %v2443_v48  ;;  %4627 = vmatpush3.bf16.msra.mxu0 %v4957_v28  ;;  %vm6223_vm3 = vnez %v6159_v30 }
 0x35b   : > { %4628 = vmatprep.subr.bf16.mxu0 %v4958_v31 }
 0x35c   : > { %4593 = vmatpush3.bf16.msra.mxu1 %v4948_v9  ;;  %v2790_v9 = vpack.c.bf16 %v2456_v45, %v2439_v7 }
 0x35d   : > { %4594 = vmatprep.subr.bf16.mxu1 %v4949_v47 }
 0x35e   : > { %4629 = vmatpush3.bf16.msra.mxu0 %v4958_v31 }
 0x35f   : > { %4579 = vmatmul.mubr.msk.bf16.gmra.mrb[20].mxu1 %vm6195_vm2, %v2468_v29  ;;  %vm6210_vm2 = vnez %v6134_v36  ;;  %v4959_v36 = vld [vmem:[%s6057_s14] sm:$0xff]  }
 0x360   : > { %4582 = vmatprep.mubr.msk.bf16.mxu1 %vm6196_vm10, %v2469_v21  ;;  %4595 = vmatpush3.bf16.msra.mxu1 %v4949_v47  ;;  %v2445_v47 = vld [vmem:[#allocation4 + $0x69] sm:$0xff]  ;;  %v2464_v29 = vsel %vm6210_vm2, %v2448_v13, 0.0  ;;  %vm6211_vm10 = vmmov %vm6170_vm0  ;;  %v5840_v21 = vld [vmem:[%s6061_s18] sm:$0xff]   ;;  %vm6226_vm2 = vnez %v6166_v41 }
 0x361   : > { %4596 = vmatprep.subr.bf16.mxu1 %v4950_v32  ;;  %v2793_v4 = vpack.c.bf16 %v2462_v63, %v2445_v47  ;;  %4646 = vmatprep.subr.bf16.mxu0 %v4959_v36  ;;  %v4982_v41 = vld [vmem:[%s6061_s18 + $0x38] sm:$0xff]  }
 0x364   : > { %4597 = vmatpush3.bf16.msra.mxu1 %v4950_v32  ;;  %v2794_v32 = vpack.c.bf16 %v2464_v29, %v2447_v26 }
 0x365   : > { %4742 = vmatprep.subr.bf16.mxu1 %v5840_v21 }
 0x367   : > { %4583 = vmatmul.mubr.msk.bf16.gmra.mrb[24].mxu1 %vm6197_vm4, %v2470_v40  ;;  %vm6212_vm4 = vnez %v6137_v51  ;;  %v4969_v51 = vld [vmem:[%s6059_s16 + $0x10] sm:$0xff]  }
 0x368   : > { %4586 = vmatprep.mubr.msk.bf16.mxu1 %vm6198_vm5, %v2471_v42  ;;  %vm6213_vm5 = vnez %v6139_v27  ;;  %v4970_v27 = vld [vmem:[%s6059_s16 + $0x18] sm:$0xff]  }
 0x36f   : > { %4587 = vmatmul.mubr.msk.bf16.gmra.mrb[28].mxu1 %vm6199_vm6, %v2472_v62  ;;  %vm6214_vm6 = vnez %v6141_v17  ;;  %v4971_v17 = vld [vmem:[%s6059_s16 + $0x20] sm:$0xff]  }
 0x370   : > { %4598 = vmatprep.mubr.msk.bf16.mxu1 %vm6200_vm7, %v2787_v58  ;;  %vm6215_vm7 = vnez %v6143_v19  ;;  %v4972_v19 = vld [vmem:[%s6059_s16 + $0x28] sm:$0xff]  }
 0x377   : > { %4599 = vmatmul.mubr.msk.bf16.vlgmr.msra.gmra.mrb[16].mxu1 %vm6203_vm8, %v2788_v2  ;;  %vm6218_vm8 = vnez %v6149_v50 }
 0x378   : > { %4602 = vmatprep.mubr.msk.bf16.mxu1 %vm6204_vm9, %v2789_v10  ;;  %4750 = vmatpush3.bf16.msra.mxu1 %v5840_v21  ;;  %v4960_v10 = vld [vmem:[%s6057_s14 + $0x8] sm:$0xff]   ;;  %vm6219_vm9 = vnez %v6151_v1 }
 0x379   : > { %4743 = vmatprep.subr.bf16.mxu1 %v5845_v33 }
 0x37c   : > { %4751 = vmatpush3.bf16.msra.mxu1 %v5845_v33 }
 0x37d   : > { %4744 = vmatprep.subr.bf16.mxu1 %v5853_v52 }
 0x37f   : > { %4603 = vmatmul.mubr.msk.bf16.gmra.mrb[20].mxu1 %vm6170_vm0, %v2790_v9  ;;  %vm6220_vm0 = vnez %v6153_v60 }
 0x380   : > { %4606 = vmatprep.mubr.msk.bf16.mxu1 %vm6205_vm1, %v2791_v18  ;;  %4752 = vmatpush3.bf16.msra.mxu1 %v5853_v52  ;;  %vm6221_vm1 = vnez %v6155_v12 }
 0x381   : > { %4745 = vmatprep.subr.bf16.mxu1 %v5860_v57 }
 0x384   : > { %4753 = vmatpush3.bf16.msra.mxu1 %v5860_v57 }
 0x385   : > { %4746 = vmatprep.subr.bf16.mxu1 %v5867_v34 }
 0x387   : > { %4607 = vmatmul.mubr.msk.bf16.gmra.mrb[24].mxu1 %vm6208_vm11, %v2792_v25  ;;  %vm6224_vm11 = vnez %v6162_v20 }
 0x388   : > { %4610 = vmatprep.mubr.msk.bf16.mxu1 %vm6209_vm12, %v2793_v4  ;;  %4754 = vmatpush3.bf16.msra.mxu1 %v5867_v34  ;;  %v4962_v4 = vld [vmem:[%s6057_s14 + $0x18] sm:$0xff]   ;;  %vm6225_vm12 = vnez %v6164_v38  ;;  %v4981_v38 = vld [vmem:[%s6061_s18 + $0x30] sm:$0xff]  }
 0x389   : > { %4747 = vmatprep.subr.bf16.mxu1 %v5874_v35 }
 0x38c   : > { %4755 = vmatpush3.bf16.msra.mxu1 %v5874_v35 }
 0x38d   : > { %4748 = vmatprep.subr.bf16.mxu1 %v4981_v38 }
 0x38f   : > { %4611 = vmatmul.mubr.msk.bf16.gmra.mrb[28].mxu1 %vm6211_vm10, %v2794_v32  ;;  %vm6227_vm10 = vnez %v6169_v23  ;;  %v4130_v23 = vld [vmem:[%s6060_s17] ss:$0 sm:$0xff] }
 0x390   : > { %4756 = vmatpush3.bf16.msra.mxu1 %v4981_v38 }
 0x391   : > { %4749 = vmatprep.subr.bf16.mxu1 %v4982_v41 }
 0x394   : > { %4757 = vmatpush3.bf16.msra.mxu1 %v4982_v41 }
 0x44a   : > { %v4600_v40 = vpop.f32.mrb[16].mxu1 }
 0x44b   : > { %v2973_v42 = vadd.f32 %v4600_v40, %v5882_v37  ;;  %v2885_v43 = vpop.f32.mrb[17].mxu1 }
 0x44c   : > { %v2971_v22 = vadd.f32 %v5882_v37, %v2885_v43  ;;  %v4601_v46 = vpop.f32.mrb[18].mxu1 }
 0x44d   : > { %v2989_v49 = vmax.f32 %v2973_v42, 0.0  ;;  %v2974_v59 = vadd.f32 %v4601_v46, %v5882_v37  ;;  %v2888_v54 = vpop.f32.mrb[19].mxu1  ;;  %v4963_v42 = vld [vmem:[%s6057_s14 + $0x20] sm:$0xff]  }
 0x44e   : > { %v2987_v62 = vmax.f32 %v2971_v22, 0.0  ;;  %v2972_v58 = vadd.f32 %v5882_v37, %v2888_v54 }
 0x44f   : > { %3005 = vst [vmem:[#allocation5 + $0x18] sm:$0xff] %v2989_v49  ;;  %v2990_v55 = vmax.f32 %v2974_v59, 0.0 }
 0x450   : > { %3003 = vst [vmem:[#allocation5 + $0x8] sm:$0xff] %v2987_v62  ;;  %v2988_v56 = vmax.f32 %v2972_v58, 0.0 }
 0x451   : > { %3006 = vst [vmem:[#allocation5 + $0x20] sm:$0xff] %v2990_v55  ;;  %v3108_v61 = vpack.c.bf16 %v2990_v55, %v2989_v49 }
 0x452   : > { %3004 = vst [vmem:[#allocation5 + $0x10] sm:$0xff] %v2988_v56  ;;  %v3107_v53 = vpack.c.bf16 %v2988_v56, %v2987_v62  ;;  %v4604_v8 = vpop.f32.mrb[20].mxu1  ;;  %v4964_v62 = vld [vmem:[%s6057_s14 + $0x28] sm:$0xff]  }
 0x453   : > { %v2977_v0 = vadd.f32 %v4604_v8, %v5882_v37  ;;  %v2901_v2 = vpop.f32.mrb[21].mxu1 }
 0x454   : > { %v2975_v3 = vadd.f32 %v5882_v37, %v2901_v2  ;;  %v4605_v5 = vpop.f32.mrb[22].mxu1  ;;  %4630 = vmatprep.mubr.bf16.mxu0 %v3107_v53 }
 0x455   : > { %v2993_v45 = vmax.f32 %v2977_v0, 0.0  ;;  %v2978_v6 = vadd.f32 %v4605_v5, %v5882_v37  ;;  %v2904_v16 = vpop.f32.mrb[23].mxu1  ;;  %4631 = vmatmul.mubr.bf16.vlgmr.msra.gmra.mrb[32].mxu0 %v3108_v61 }
 0x456   : > { %v2991_v7 = vmax.f32 %v2975_v3, 0.0  ;;  %v2976_v9 = vadd.f32 %v5882_v37, %v2904_v16  ;;  %4647 = vmatpush3.bf16.msra.mxu0 %v4959_v36 }
 0x457   : > { %3009 = vst [vmem:[#allocation5 + $0x38] sm:$0xff] %v2993_v45  ;;  %v2994_v18 = vmax.f32 %v2978_v6, 0.0  ;;  %4648 = vmatprep.subr.bf16.mxu0 %v4960_v10  ;;  %v3019_v16 = vld [vmem:[#allocation5 + $0x7] sm:$0xff] }
 0x458   : > { %3007 = vst [vmem:[#allocation5 + $0x28] sm:$0xff] %v2991_v7  ;;  %v2992_v14 = vmax.f32 %v2976_v9, 0.0  ;;  %v4967_v9 = vld [vmem:[%s6059_s16] sm:$0xff]  }
 0x459   : > { %3010 = vst [vmem:[#allocation5 + $0x40] sm:$0xff] %v2994_v18  ;;  %v3110_v24 = vpack.c.bf16 %v2994_v18, %v2993_v45  ;;  %v3020_v45 = vld [vmem:[#allocation5 + $0xf] sm:$0xff]  ;;  %v3021_v18 = vld [vmem:[#allocation5 + $0x17] sm:$0xff] }
 0x45a   : > { %3008 = vst [vmem:[#allocation5 + $0x30] sm:$0xff] %v2992_v14  ;;  %v3109_v47 = vpack.c.bf16 %v2992_v14, %v2991_v7  ;;  %v4608_v63 = vpop.f32.mrb[24].mxu1  ;;  %4649 = vmatpush3.bf16.msra.mxu0 %v4960_v10  ;;  %v4965_v10 = vld [vmem:[%s6057_s14 + $0x30] sm:$0xff]   ;;  %v4075_v7 = vpack.c.bf16 %v3020_v45, %v3019_v16 }
 0x45b   : > { %v2981_v48 = vadd.f32 %v4608_v63, %v5882_v37  ;;  %v2917_v25 = vpop.f32.mrb[25].mxu1  ;;  %4650 = vmatprep.subr.bf16.mxu0 %v4961_v11  ;;  %v4968_v63 = vld [vmem:[%s6059_s16 + $0x8] sm:$0xff]  }
 0x45c   : > { %v2979_v13 = vadd.f32 %v5882_v37, %v2917_v25  ;;  %v4609_v26 = vpop.f32.mrb[26].mxu1  ;;  %4634 = vmatprep.mubr.bf16.mxu0 %v3109_v47 }
 0x45d   : > { %v2997_v29 = vmax.f32 %v2981_v48, 0.0  ;;  %v2982_v32 = vadd.f32 %v4609_v26, %v5882_v37  ;;  %v2920_v28 = vpop.f32.mrb[27].mxu1  ;;  %4635 = vmatmul.mubr.bf16.gmra.mrb[36].mxu0 %v3110_v24 }
 0x45e   : > { %v2995_v31 = vmax.f32 %v2979_v13, 0.0  ;;  %v2980_v36 = vadd.f32 %v5882_v37, %v2920_v28  ;;  %4651 = vmatpush3.bf16.msra.mxu0 %v4961_v11  ;;  %v3022_v11 = vld [vmem:[#allocation5 + $0x1f] sm:$0xff] }
 0x45f   : > { %3013 = vst [vmem:[#allocation5 + $0x58] sm:$0xff] %v2997_v29  ;;  %v2998_v40 = vmax.f32 %v2982_v32, 0.0  ;;  %4652 = vmatprep.subr.bf16.mxu0 %v4962_v4  ;;  %v4078_v24 = vpack.c.bf16 %v3022_v11, %v3021_v18  ;;  %v3023_v47 = vld [vmem:[#allocation5 + $0x27] sm:$0xff] }
 0x460   : > { %3011 = vst [vmem:[#allocation5 + $0x48] sm:$0xff] %v2995_v31  ;;  %v2996_v43 = vmax.f32 %v2980_v36, 0.0  ;;  %v3054_v50 = vld [vmem:[#allocation5 + $0x21] sm:$0xff] }
 0x461   : > { %3014 = vst [vmem:[#allocation5 + $0x60] sm:$0xff] %v2998_v40  ;;  %v3112_v22 = vpack.c.bf16 %v2998_v40, %v2997_v29  ;;  %v3024_v14 = vld [vmem:[#allocation5 + $0x2f] sm:$0xff]  ;;  %v3025_v25 = vld [vmem:[#allocation5 + $0x37] sm:$0xff] }
 0x462   : > { %3012 = vst [vmem:[#allocation5 + $0x50] sm:$0xff] %v2996_v43  ;;  %v3111_v46 = vpack.c.bf16 %v2996_v43, %v2995_v31  ;;  %v4612_v49 = vpop.f32.mrb[28].mxu1  ;;  %4653 = vmatpush3.bf16.msra.mxu0 %v4962_v4  ;;  %v4081_v48 = vpack.c.bf16 %v3024_v14, %v3023_v47  ;;  %v3026_v4 = vld [vmem:[#allocation5 + $0x3f] sm:$0xff] }
 0x463   : > { %v2985_v59 = vadd.f32 %v4612_v49, %v5882_v37  ;;  %v2933_v54 = vpop.f32.mrb[29].mxu1  ;;  %4654 = vmatprep.subr.bf16.mxu0 %v4963_v42  ;;  %v4084_v26 = vpack.c.bf16 %v3026_v4, %v3025_v25  ;;  %v3051_v49 = vld [vmem:[#allocation5 + $0x9] sm:$0xff] }
 0x464   : > { %v2983_v58 = vadd.f32 %v5882_v37, %v2933_v54  ;;  %v4613_v55 = vpop.f32.mrb[30].mxu1  ;;  %4638 = vmatprep.mubr.bf16.mxu0 %v3111_v46 }
 0x465   : > { %v3001_v56 = vmax.f32 %v2985_v59, 0.0  ;;  %v2986_v61 = vadd.f32 %v4613_v55, %v5882_v37  ;;  %v2936_v53 = vpop.f32.mrb[31].mxu1  ;;  %4639 = vmatmul.mubr.bf16.gmra.mrb[40].mxu0 %v3112_v22  ;;  %v3052_v59 = vld [vmem:[#allocation5 + $0x11] sm:$0xff] }
 0x466   : > { %v2999_v8 = vmax.f32 %v2983_v58, 0.0  ;;  %v2984_v0 = vadd.f32 %v5882_v37, %v2936_v53  ;;  %4655 = vmatpush3.bf16.msra.mxu0 %v4963_v42  ;;  %v4966_v37 = vld [vmem:[%s6057_s14 + $0x38] sm:$0xff]   ;;  %v3056_v55 = vld [vmem:[#allocation5 + $0x31] sm:$0xff] }
 0x467   : > { %3017 = vst [vmem:[#allocation5 + $0x78] sm:$0xff] %v3001_v56  ;;  %v3002_v2 = vmax.f32 %v2986_v61, 0.0  ;;  %4656 = vmatprep.subr.bf16.mxu0 %v4964_v62  ;;  %v3027_v29 = vld [vmem:[#allocation5 + $0x47] sm:$0xff] }
 0x468   : > { %3015 = vst [vmem:[#allocation5 + $0x68] sm:$0xff] %v2999_v8  ;;  %v3000_v3 = vmax.f32 %v2984_v0, 0.0  ;;  %v3030_v31 = vld [vmem:[#allocation5 + $0x5f] sm:$0xff]  ;;  %v3055_v58 = vld [vmem:[#allocation5 + $0x29] sm:$0xff] }
 0x469   : > { %3018 = vst [vmem:[#allocation5 + $0x80] sm:$0xff] %v3002_v2  ;;  %v3114_v5 = vpack.c.bf16 %v3002_v2, %v3001_v56  ;;  %v3028_v13 = vld [vmem:[#allocation5 + $0x4f] sm:$0xff]  ;;  %v3029_v28 = vld [vmem:[#allocation5 + $0x57] sm:$0xff]  ;;  %v4113_v53 = vpack.c.bf16 %v3056_v55, %v3055_v58  ;;  %v3058_v1 = vld [vmem:[#allocation5 + $0x41] sm:$0xff] }
 0x46a   : > { %3016 = vst [vmem:[#allocation5 + $0x70] sm:$0xff] %v3000_v3  ;;  %v3113_v6 = vpack.c.bf16 %v3000_v3, %v2999_v8  ;;  %4657 = vmatpush3.bf16.msra.mxu0 %v4964_v62  ;;  %v4087_v32 = vpack.c.bf16 %v3028_v13, %v3027_v29  ;;  %v4090_v40 = vpack.c.bf16 %v3030_v31, %v3029_v28  ;;  %v3053_v56 = vld [vmem:[#allocation5 + $0x19] sm:$0xff]  ;;  %v3059_v60 = vld [vmem:[#allocation5 + $0x49] sm:$0xff]  ;;  %v3060_v8 = vld [vmem:[#allocation5 + $0x51] sm:$0xff] }
 0x46b   : > { %4658 = vmatprep.subr.bf16.mxu0 %v4965_v10  ;;  %v4107_v62 = vpack.c.bf16 %v3052_v59, %v3051_v49  ;;  %v4110_v61 = vpack.c.bf16 %v3054_v50, %v3053_v56  ;;  %v3057_v0 = vld [vmem:[#allocation5 + $0x39] sm:$0xff] }
 0x46c   : > { %4642 = vmatprep.mubr.bf16.mxu0 %v3113_v6  ;;  %v4116_v2 = vpack.c.bf16 %v3058_v1, %v3057_v0  ;;  %v3061_v3 = vld [vmem:[#allocation5 + $0x59] sm:$0xff] }
 0x46d   : > { %4643 = vmatmul.mubr.bf16.gmra.mrb[44].mxu0 %v3114_v5 }
 0x46e   : > { %4659 = vmatpush3.bf16.msra.mxu0 %v4965_v10  ;;  %4662 = vmatprep.mubr.msk.bf16.mxu0 %vm6212_vm4, %v4075_v7  ;;  %v4119_v10 = vpack.c.bf16 %v3060_v8, %v3059_v60  ;;  %vm3821_vm4 = vcmask 64512  }
 0x46f   : > { %4660 = vmatprep.subr.bf16.mxu0 %v4966_v37  ;;  %v3031_v42 = vld [vmem:[#allocation5 + $0x67] sm:$0xff] }
 0x470   : > { %v3034_v46 = vld [vmem:[#allocation5 + $0x7f] sm:$0xff] }
 0x471   : > { %v3032_v36 = vld [vmem:[#allocation5 + $0x6f] sm:$0xff]  ;;  %v3033_v22 = vld [vmem:[#allocation5 + $0x77] sm:$0xff]  ;;  %v3062_v12 = vld [vmem:[#allocation5 + $0x61] sm:$0xff] }
 0x472   : > { %4661 = vmatpush3.bf16.msra.mxu0 %v4966_v37  ;;  %v4093_v43 = vpack.c.bf16 %v3032_v36, %v3031_v42  ;;  %v4096_v54 = vpack.c.bf16 %v3034_v46, %v3033_v22  ;;  %v3063_v15 = vld [vmem:[#allocation5 + $0x69] sm:$0xff]  ;;  %v3065_v30 = vld [vmem:[#allocation5 + $0x79] sm:$0xff]  ;;  %v3066_v20 = vld [vmem:[#allocation5 + $0x81] sm:$0xff] }
 0x473   : > { %4678 = vmatprep.subr.bf16.mxu0 %v4967_v9 }
 0x475   : > { %4663 = vmatmul.mubr.msk.bf16.vlgmr.msra.gmra.mrb[32].mxu0 %vm6213_vm5, %v4078_v24 }
 0x476   : > { %4666 = vmatprep.mubr.msk.bf16.mxu0 %vm6214_vm6, %v4081_v48  ;;  %4679 = vmatpush3.bf16.msra.mxu0 %v4967_v9 }
 0x477   : > { %4680 = vmatprep.subr.bf16.mxu0 %v4968_v63 }
 0x47a   : > { %4681 = vmatpush3.bf16.msra.mxu0 %v4968_v63 }
 0x47b   : > { %4682 = vmatprep.subr.bf16.mxu0 %v4969_v51 }
 0x47d   : > { %4667 = vmatmul.mubr.msk.bf16.gmra.mrb[36].mxu0 %vm6215_vm7, %v4084_v26 }
 0x47e   : > { %4670 = vmatprep.mubr.msk.bf16.mxu0 %vm6216_vm13, %v4087_v32  ;;  %4683 = vmatpush3.bf16.msra.mxu0 %v4969_v51 }
 0x47f   : > { %4684 = vmatprep.subr.bf16.mxu0 %v4970_v27 }
 0x482   : > { %4685 = vmatpush3.bf16.msra.mxu0 %v4970_v27 }
 0x483   : > { %4686 = vmatprep.subr.bf16.mxu0 %v4971_v17 }
 0x485   : > { %4671 = vmatmul.mubr.msk.bf16.gmra.mrb[40].mxu0 %vm6217_vm15, %v4090_v40 }
 0x486   : > { %4674 = vmatprep.mubr.msk.bf16.mxu0 %vm6218_vm8, %v4093_v43  ;;  %4687 = vmatpush3.bf16.msra.mxu0 %v4971_v17 }
 0x487   : > { %4688 = vmatprep.subr.bf16.mxu0 %v4972_v19 }
 0x48a   : > { %4689 = vmatpush3.bf16.msra.mxu0 %v4972_v19 }
 0x48b   : > { %4690 = vmatprep.subr.bf16.mxu0 %v4973_v39 }
 0x48d   : > { %4675 = vmatmul.mubr.msk.bf16.gmra.mrb[44].mxu0 %vm6219_vm9, %v4096_v54 }
 0x48e   : > { %4691 = vmatpush3.bf16.msra.mxu0 %v4973_v39  ;;  %4694 = vmatprep.mubr.msk.bf16.mxu0 %vm6220_vm0, %v4107_v62 }
 0x48f   : > { %4692 = vmatprep.subr.bf16.mxu0 %v4974_v44 }
 0x492   : > { %4693 = vmatpush3.bf16.msra.mxu0 %v4974_v44 }
 0x493   : > { %4710 = vmatprep.subr.bf16.mxu0 %v5840_v21 }
 0x495   : > { %4695 = vmatmul.mubr.msk.bf16.vlgmr.msra.gmra.mrb[32].mxu0 %vm6221_vm1, %v4110_v61 }
 0x496   : > { %4698 = vmatprep.mubr.msk.bf16.mxu0 %vm6222_vm14, %v4113_v53  ;;  %4711 = vmatpush3.bf16.msra.mxu0 %v5840_v21  ;;  %v3064_v21 = vld [vmem:[#allocation5 + $0x71] sm:$0xff] }
 0x497   : > { %4712 = vmatprep.subr.bf16.mxu0 %v5845_v33  ;;  %v4125_v5 = vpack.c.bf16 %v3064_v21, %v3063_v15 }
 0x49a   : > { %4713 = vmatpush3.bf16.msra.mxu0 %v5845_v33  ;;  %v4122_v33 = vpack.c.bf16 %v3062_v12, %v3061_v3 }
 0x49b   : > { %4714 = vmatprep.subr.bf16.mxu0 %v5853_v52 }
 0x49d   : > { %4699 = vmatmul.mubr.msk.bf16.gmra.mrb[36].mxu0 %vm6223_vm3, %v4116_v2 }
 0x49e   : > { %4702 = vmatprep.mubr.msk.bf16.mxu0 %vm6224_vm11, %v4119_v10  ;;  %4715 = vmatpush3.bf16.msra.mxu0 %v5853_v52  ;;  %v4128_v52 = vpack.c.bf16 %v3066_v20, %v3065_v30 }
 0x49f   : > { %4716 = vmatprep.subr.bf16.mxu0 %v5860_v57 }
 0x4a2   : > { %4717 = vmatpush3.bf16.msra.mxu0 %v5860_v57 }
 0x4a3   : > { %4718 = vmatprep.subr.bf16.mxu0 %v5867_v34 }
 0x4a5   : > { %4703 = vmatmul.mubr.msk.bf16.gmra.mrb[40].mxu0 %vm6225_vm12, %v4122_v33  ;;  %v4131_v33 = vld [vmem:[%s6062_s19] ss:$0 sm:$0xff] }
 0x4a6   : > { %4706 = vmatprep.mubr.msk.bf16.mxu0 %vm6226_vm2, %v4125_v5  ;;  %4719 = vmatpush3.bf16.msra.mxu0 %v5867_v34 }
 0x4a7   : > { %4720 = vmatprep.subr.bf16.mxu0 %v5874_v35 }
 0x4aa   : > { %4721 = vmatpush3.bf16.msra.mxu0 %v5874_v35 }
 0x4ab   : > { %4722 = vmatprep.subr.bf16.mxu0 %v4981_v38 }
 0x4ad   : > { %4707 = vmatmul.mubr.msk.bf16.gmra.mrb[44].mxu0 %vm6227_vm10, %v4128_v52 }
 0x4ae   : > { %4723 = vmatpush3.bf16.msra.mxu0 %v4981_v38 }
 0x4af   : > { %4724 = vmatprep.subr.bf16.mxu0 %v4982_v41 }
 0x4b2   : > { %4725 = vmatpush3.bf16.msra.mxu0 %v4982_v41 }
 0x568   : > { %v4696_v57 = vpop.f32.mrb[32].mxu0 }
 0x569   : > { %v3615_v34 = vadd.f32 %v4696_v57, %v4130_v23  ;;  %v3527_v35 = vpop.f32.mrb[33].mxu0 }
 0x56a   : > { %v3613_v45 = vadd.f32 %v4130_v23, %v3527_v35  ;;  %v4697_v6 = vpop.f32.mrb[34].mxu0 }
 0x56b   : > { %v3616_v16 = vadd.f32 %v4697_v6, %v4130_v23  ;;  %v3530_v37 = vpop.f32.mrb[35].mxu0  ;;  %v3631_v9 = vmax.f32 %v3615_v34, 0.0 }
 0x56c   : > { %v3614_v7 = vadd.f32 %v4130_v23, %v3530_v37  ;;  %v3629_v11 = vmax.f32 %v3613_v45, 0.0 }
 0x56d   : > { %v3632_v18 = vmax.f32 %v3616_v16, 0.0 }
 0x56e   : > { %v3630_v14 = vmax.f32 %v3614_v7, 0.0 }
 0x56f   : > { %v3646_v24 = vpack.c.bf16 %v3632_v18, %v3631_v9 }
 0x570   : > { %v3645_v47 = vpack.c.bf16 %v3630_v14, %v3629_v11  ;;  %v4700_v63 = vpop.f32.mrb[36].mxu0 }
 0x571   : > { %v3619_v48 = vadd.f32 %v4700_v63, %v4130_v23  ;;  %v3543_v51 = vpop.f32.mrb[37].mxu0 }
 0x572   : > { %v3617_v25 = vadd.f32 %v4130_v23, %v3543_v51  ;;  %v4701_v4 = vpop.f32.mrb[38].mxu0  ;;  %4726 = vmatprep.mubr.bf16.mxu0 %v3645_v47 }
 0x573   : > { %v3620_v13 = vadd.f32 %v4701_v4, %v4130_v23  ;;  %v3546_v26 = vpop.f32.mrb[39].mxu0  ;;  %4727 = vmatmul.mubr.bf16.vlgmr.msra.gmra.mrb[48].mxu0 %v3646_v24  ;;  %v3635_v27 = vmax.f32 %v3619_v48, 0.0 }
 0x574   : > { %v3618_v29 = vadd.f32 %v4130_v23, %v3546_v26  ;;  %v3633_v17 = vmax.f32 %v3617_v25, 0.0 }
 0x575   : > { %v3636_v32 = vmax.f32 %v3620_v13, 0.0 }
 0x576   : > { %v3634_v28 = vmax.f32 %v3618_v29, 0.0 }
 0x577   : > { %v3648_v31 = vpack.c.bf16 %v3636_v32, %v3635_v27 }
 0x578   : > { %v3647_v36 = vpack.c.bf16 %v3634_v28, %v3633_v17  ;;  %v4704_v40 = vpop.f32.mrb[40].mxu0 }
 0x579   : > { %v3623_v42 = vadd.f32 %v4704_v40, %v4130_v23  ;;  %v3559_v19 = vpop.f32.mrb[41].mxu0 }
 0x57a   : > { %v3621_v43 = vadd.f32 %v4130_v23, %v3559_v19  ;;  %v4705_v39 = vpop.f32.mrb[42].mxu0  ;;  %4730 = vmatprep.mubr.bf16.mxu1 %v3647_v36 }
 0x57b   : > { %v3624_v22 = vadd.f32 %v4705_v39, %v4130_v23  ;;  %v3562_v46 = vpop.f32.mrb[43].mxu0  ;;  %4731 = vmatmul.mubr.bf16.vlgmr.msra.gmra.mrb[32].mxu1 %v3648_v31  ;;  %v3639_v59 = vmax.f32 %v3623_v42, 0.0 }
 0x57c   : > { %v3622_v49 = vadd.f32 %v4130_v23, %v3562_v46  ;;  %v3637_v44 = vmax.f32 %v3621_v43, 0.0 }
 0x57d   : > { %v3640_v54 = vmax.f32 %v3624_v22, 0.0 }
 0x57e   : > { %v3638_v62 = vmax.f32 %v3622_v49, 0.0 }
 0x57f   : > { %v3650_v50 = vpack.c.bf16 %v3640_v54, %v3639_v59 }
 0x580   : > { %v3649_v58 = vpack.c.bf16 %v3638_v62, %v3637_v44  ;;  %v4708_v55 = vpop.f32.mrb[44].mxu0 }
 0x581   : > { %v3627_v56 = vadd.f32 %v4708_v55, %v4130_v23  ;;  %v3575_v61 = vpop.f32.mrb[45].mxu0 }
 0x582   : > { %v3625_v53 = vadd.f32 %v4130_v23, %v3575_v61  ;;  %v4709_v1 = vpop.f32.mrb[46].mxu0  ;;  %4734 = vmatprep.mubr.bf16.mxu1 %v3649_v58 }
 0x583   : > { %v3628_v60 = vadd.f32 %v4709_v1, %v4130_v23  ;;  %v3578_v8 = vpop.f32.mrb[47].mxu0  ;;  %4735 = vmatmul.mubr.bf16.gmra.mrb[36].mxu1 %v3650_v50  ;;  %v3643_v2 = vmax.f32 %v3627_v56, 0.0 }
 0x584   : > { %v3626_v0 = vadd.f32 %v4130_v23, %v3578_v8  ;;  %v3641_v12 = vmax.f32 %v3625_v53, 0.0 }
 0x585   : > { %v3644_v10 = vmax.f32 %v3628_v60, 0.0 }
 0x586   : > { %v3642_v15 = vmax.f32 %v3626_v0, 0.0 }
 0x587   : > { %v3652_v21 = vpack.c.bf16 %v3644_v10, %v3643_v2 }
 0x588   : > { %v3651_v3 = vpack.c.bf16 %v3642_v15, %v3641_v12 }
 0x58a   : > { %4738 = vmatprep.mubr.bf16.mxu1 %v3651_v3 }
 0x58b   : > { %4739 = vmatmul.mubr.bf16.gmra.mrb[40].mxu1 %v3652_v21 }
 0x646   : > { %v4728_v5 = vpop.f32.mrb[48].mxu0 }
 0x647   : > { %v3767_v30 = vadd.f32 %v4728_v5, %v4131_v33  ;;  %v3758_v20 = vpop.f32.mrb[49].mxu0 }
 0x648   : > { %v3759_v52 = vadd.f32 %v4131_v33, %v3758_v20  ;;  %v4729_v38 = vpop.f32.mrb[50].mxu0 }
 0x649   : > { %3824 = vst.msk [vmem:[%s6006_s3 + $0x10] sm:$0xff] %vm3821_vm4, %v3767_v30  ;;  %v3770_v41 = vadd.f32 %v4729_v38, %v4131_v33  ;;  %v3761_v23 = vpop.f32.mrb[51].mxu0 }
 0x64a   : > { %3822 = vst.msk [vmem:[%s6006_s3] sm:$0xff] %vm3821_vm4, %v3759_v52  ;;  %v3762_v57 = vadd.f32 %v4131_v33, %v3761_v23 }
 0x64b   : > { %3825 = vst.msk [vmem:[%s6006_s3 + $0x18] sm:$0xff] %vm3821_vm4, %v3770_v41 }
 0x64c   : > { %3823 = vst.msk [vmem:[%s6006_s3 + $0x8] sm:$0xff] %vm3821_vm4, %v3762_v57 }
 0x64e   : > { %v4732_v34 = vpop.f32.mrb[32].mxu1 }
 0x64f   : > { %v3783_v35 = vadd.f32 %v4732_v34, %v4131_v33  ;;  %v3774_v45 = vpop.f32.mrb[33].mxu1 }
 0x650   : > { %v3775_v6 = vadd.f32 %v4131_v33, %v3774_v45  ;;  %v4733_v16 = vpop.f32.mrb[34].mxu1 }
 0x651   : > { %3828 = vst.msk [vmem:[%s6006_s3 + $0x30] sm:$0xff] %vm3821_vm4, %v3783_v35  ;;  %v3786_v37 = vadd.f32 %v4733_v16, %v4131_v33  ;;  %v3777_v7 = vpop.f32.mrb[35].mxu1 }
 0x652   : > { %3826 = vst.msk [vmem:[%s6006_s3 + $0x20] sm:$0xff] %vm3821_vm4, %v3775_v6  ;;  %v3778_v9 = vadd.f32 %v4131_v33, %v3777_v7 }
 0x653   : > { %3829 = vst.msk [vmem:[%s6006_s3 + $0x38] sm:$0xff] %vm3821_vm4, %v3786_v37 }
 0x654   : > { %3827 = vst.msk [vmem:[%s6006_s3 + $0x28] sm:$0xff] %vm3821_vm4, %v3778_v9 }
 0x656   : > { %v4736_v18 = vpop.f32.mrb[36].mxu1 }
 0x657   : > { %v3799_v11 = vadd.f32 %v4736_v18, %v4131_v33  ;;  %v3790_v14 = vpop.f32.mrb[37].mxu1 }
 0x658   : > { %v3791_v24 = vadd.f32 %v4131_v33, %v3790_v14  ;;  %v4737_v47 = vpop.f32.mrb[38].mxu1 }
 0x659   : > { %3832 = vst.msk [vmem:[%s6006_s3 + $0x50] sm:$0xff] %vm3821_vm4, %v3799_v11  ;;  %v3802_v63 = vadd.f32 %v4737_v47, %v4131_v33  ;;  %v3793_v48 = vpop.f32.mrb[39].mxu1 }
 0x65a   : > { %3830 = vst.msk [vmem:[%s6006_s3 + $0x40] sm:$0xff] %vm3821_vm4, %v3791_v24  ;;  %v3794_v51 = vadd.f32 %v4131_v33, %v3793_v48 }
 0x65b   : > { %3833 = vst.msk [vmem:[%s6006_s3 + $0x58] sm:$0xff] %vm3821_vm4, %v3802_v63 }
 0x65c   : > { %3831 = vst.msk [vmem:[%s6006_s3 + $0x48] sm:$0xff] %vm3821_vm4, %v3794_v51 }
 0x65e   : > { %v4740_v25 = vpop.f32.mrb[40].mxu1 }
 0x65f   : > { %v3815_v4 = vadd.f32 %v4740_v25, %v4131_v33  ;;  %v3806_v13 = vpop.f32.mrb[41].mxu1 }
 0x660   : > { %v3807_v26 = vadd.f32 %v4131_v33, %v3806_v13  ;;  %v4741_v29 = vpop.f32.mrb[42].mxu1 }
 0x661   : > { %3836 = vst.msk [vmem:[%s6006_s3 + $0x70] sm:$0xff] %vm3821_vm4, %v3815_v4  ;;  %v3818_v27 = vadd.f32 %v4741_v29, %v4131_v33  ;;  %v3809_v32 = vpop.f32.mrb[43].mxu1 }
 0x662   : > { %3834 = vst.msk [vmem:[%s6006_s3 + $0x60] sm:$0xff] %vm3821_vm4, %v3807_v26  ;;  %v3810_v17 = vadd.f32 %v4131_v33, %v3809_v32 }
 0x663   : > { %3837 = vst.msk [vmem:[%s6006_s3 + $0x78] sm:$0xff] %vm3821_vm4, %v3818_v27 }
 0x664   : > { %3835 = vst.msk [vmem:[%s6006_s3 + $0x68] sm:$0xff] %vm3821_vm4, %v3810_v17 }
 0x665 PF: > { %s30_s1 = sadd.s32 1, %s4989_s1  }
 0x666   : > { %p27_p4 = scmp.ge.s32.totalorder %s30_s1, 4  }
 0x668   :  { %29 = sbr.rel (!%p27_p4) target bundleno = 6 (0x6), region = 130 }

</bundles_post_ra>
